<compile_context>
chip_gen: v5e
topology: v5e:2x2
jax: 0.10.0
libtpu: 0.0.40
codegen_flags: <defaults>
</compile_context>

<pallas_src>
import functools

import jax
import jax.numpy as jnp
from jax import lax
from jax.experimental import pallas as pl
from jax.experimental.pallas import tpu as pltpu


def _dwconv_kernel(tb, H, x_ref, w_ref, b_ref, o_ref):
    # x_ref: (tb*H, W, TC)  unpadded input rows (tb images stacked along axis 0)
    # w_ref: (9, TC)        depthwise taps, index = ky*3 + kx
    # b_ref: (1, TC)        bias
    # o_ref: (tb*H, W, TC)  output rows
    _, W, C = x_ref.shape
    f32 = jnp.float32

    # ---- loop-invariant values (computed once per grid step) ----
    w_f32 = w_ref[...].astype(f32)                               # (9, C)
    if W * C <= 2048:
        # Pre-broadcast taps to full (W, C) rows (<= 2 vregs each) so no
        # implicit broadcast_in_dim is re-materialized inside the row loop.
        def tap(k):
            return jnp.broadcast_to(w_f32[k][None, :], (W, C))
    else:
        def tap(k):
            return w_f32[k][None, :]
    w00, w01, w02 = tap(0), tap(1), tap(2)    # ky = 0 (dy = -1), kx = 0..2
    w10, w11, w12 = tap(3), tap(4), tap(5)    # ky = 1 (dy =  0)
    w20, w21, w22 = tap(6), tap(7), tap(8)    # ky = 2 (dy = +1)
    bias = jnp.broadcast_to(b_ref[...].astype(f32), (W, C))

    # Masks for the two horizontal shifts: pltpu.roll wraps around, and the
    # wrapped element corresponds to the zero-padding column -> clear it.
    col = lax.broadcasted_iota(jnp.int32, (W, C), 0)
    mask_left = col >= 1            # out[w] += col_l[w-1]; w = 0 is padding
    mask_right = col <= W - 2       # out[w] += col_r[w+1]; w = W-1 is padding
    zero = jnp.zeros((W, C), f32)
    out_dtype = o_ref.dtype

    def combine(col_l, col_c, col_r):
        # out[w] = bias + col_c[w] + col_l[w-1] + col_r[w+1]
        left = jnp.where(mask_left, pltpu.roll(col_l, shift=1, axis=0), zero)
        right = jnp.where(mask_right, pltpu.roll(col_r, shift=W - 1, axis=0), zero)
        return (bias + col_c + left + right).astype(out_dtype)

    for bi in range(tb):                      # static batch sub-block loop
        base = bi * H

        # ---- top edge row: dy = -1 taps fall on the zero padding ----
        r0 = x_ref[base + 0].astype(f32)
        r1 = x_ref[base + 1].astype(f32)
        o_ref[base + 0] = combine(r0 * w10 + r1 * w20,
                                  r0 * w11 + r1 * w21,
                                  r0 * w12 + r1 * w22)

        # ---- interior rows: no vertical clamp / select ----
        def body(h, carry):
            rm = x_ref[base + h - 1].astype(f32)
            rc = x_ref[base + h].astype(f32)
            rp = x_ref[base + h + 1].astype(f32)
            o_ref[base + h] = combine(rm * w00 + rc * w10 + rp * w20,
                                      rm * w01 + rc * w11 + rp * w21,
                                      rm * w02 + rc * w12 + rp * w22)
            return carry

        lax.fori_loop(1, H - 1, body, 0, unroll=True)

        # ---- bottom edge row: dy = +1 taps fall on the zero padding ----
        rm = x_ref[base + H - 2].astype(f32)
        rc = x_ref[base + H - 1].astype(f32)
        o_ref[base + H - 1] = combine(rm * w00 + rc * w10,
                                      rm * w01 + rc * w11,
                                      rm * w02 + rc * w12)


def _pick_tiles(B, H, W, C, itemsize):
    """Choose (batch tile, channel tile) for the grid."""
    block_budget = 5 << 20        # per single in/out block (~4x when double-buffered)

    if C % 128 == 0:
        tc = C                    # full-C tiles -> contiguous DMA bursts
        while tc > 128:
            too_big = H * W * tc * itemsize > block_budget
            need_split = (B == 1) and (C // tc) < 2   # keep >=2 grid steps (v7x megacore)
            half = tc // 2
            if (too_big or need_split) and half % 128 == 0 and C % half == 0:
                tc = half
            else:
                break
    else:
        # TODO(synk): lane-dense (H, W*C) repack path for C not divisible by 128.
        tc = C
    n_ct = C // tc

    # Batch blocking: amortize ~0.35us/step overhead by growing the per-step
    # block toward ~1 MiB, but never drop below 2 total grid steps and stay
    # inside the VMEM budget.
    tb = 1
    while (tb < B and B % (2 * tb) == 0
           and 2 * tb * H * W * tc * itemsize <= block_budget
           and tb * H * W * tc * itemsize < (1 << 20)
           and (B // (2 * tb)) * n_ct >= 2):
        tb *= 2
    return tb, tc


def dwconv_pallas(x, weight, bias, H, W):
    """x: (B, N, C) with N == H*W.  weight: (C, 1, 3, 3).  bias: (C,).

    Returns (B, N, C), matching PyTorch's
      Conv2d(C, C, 3, stride=1, padding=1, groups=C, bias=True).
    """
    B, N, C = x.shape
    assert N == H * W
    assert H >= 2, "kernel peels the top/bottom rows; needs H >= 2"

    itemsize = x.dtype.itemsize
    tb, tc = _pick_tiles(B, H, W, C, itemsize)
    n_ct = C // tc

    # Glue (plain JAX, metadata-only reshapes): row-stacked channels-last view
    # + weight repack.  No jnp.pad -> no extra HBM round-trip of the input.
    x_rows = x.reshape(B * H, W, C)                      # token n = h*W + w
    w9c = jnp.transpose(weight.reshape(C, 9), (1, 0))    # (9, C), index ky*3 + kx
    b1c = bias.reshape(1, C)

    cost = pl.CostEstimate(
        flops=2 * 9 * B * H * W * C,
        transcendentals=0,
        bytes_accessed=2 * B * H * W * C * itemsize + 10 * C * weight.dtype.itemsize)

    # Raise the scoped-VMEM limit only when the chosen blocks need it; cap well
    # under v7x's 64 MiB physical VMEM.
    block_bytes = tb * H * W * tc * itemsize
    vmem_needed = 4 * block_bytes + 4 * 10 * tc * 4 + (1 << 20)
    vmem_limit = int(min(vmem_needed, 48 << 20)) if vmem_needed > (16 << 20) else None

    kernel = functools.partial(_dwconv_kernel, tb, H)
    out_rows = pl.pallas_call(
        kernel,
        out_shape=jax.ShapeDtypeStruct((B * H, W, C), x.dtype),
        grid_spec=pltpu.PrefetchScalarGridSpec(
            num_scalar_prefetch=0,
            grid=(B // tb, n_ct),
            in_specs=[
                pl.BlockSpec((tb * H, W, tc), lambda b, c: (b, 0, c)),
                pl.BlockSpec((9, tc), lambda b, c: (0, c)),
                pl.BlockSpec((1, tc), lambda b, c: (0, c)),
            ],
            out_specs=pl.BlockSpec((tb * H, W, tc), lambda b, c: (b, 0, c)),
        ),
        compiler_params=pltpu.CompilerParams(
            dimension_semantics=("parallel", "parallel"),
            vmem_limit_bytes=vmem_limit),
        cost_estimate=cost,
    )(x_rows, w9c, b1c)

    return out_rows.reshape(B, N, C)


def _dwconv_ref(x, weight, bias, H, W):
    """Pure-JAX reference (NCHW, matches PyTorch semantics)."""
    B, N, C = x.shape
    x_nchw = jnp.transpose(x, (0, 2, 1)).reshape(B, C, H, W)
    out = lax.conv_general_dilated(
        x_nchw, weight,
        window_strides=(1, 1), padding=((1, 1), (1, 1)),
        dimension_numbers=("NCHW", "OIHW", "NCHW"),
        feature_group_count=C)
    out = out + bias[None, :, None, None]
    return jnp.transpose(out.reshape(B, C, N), (0, 2, 1))


def _run_case(key, B, C, H, W):
    N = H * W
    kx, kw, kb = jax.random.split(key, 3)
    x = jax.random.normal(kx, (B, N, C), dtype=jnp.float32)
    weight = jax.random.normal(kw, (C, 1, 3, 3), dtype=jnp.float32) * 0.1
    bias = jax.random.normal(kb, (C,), dtype=jnp.float32) * 0.1

    out = dwconv_pallas(x, weight, bias, H, W)
    out = jax.block_until_ready(out)

    ref = _dwconv_ref(x, weight, bias, H, W)
    assert out.shape == (B, N, C)
    assert jnp.allclose(out, ref, atol=1e-4, rtol=1e-4), (
        f"mismatch B={B} C={C} H={H} W={W}: "
        f"max err {jnp.max(jnp.abs(out - ref))}")


if __name__ == "__main__":
    key = jax.random.PRNGKey(0)
    k1, k2 = jax.random.split(key)
    # Lane-dense channel count; grid = (2 batch blocks, 1 channel tile).
    _run_case(k1, B=2, C=128, H=16, W=16)
    # B=1: channel axis is split into 2 tiles so >=2 parallel grid steps remain.
    _run_case(k2, B=1, C=256, H=8, W=8)
    print("KERNEL_OK")
</pallas_src>

<mosaic_0001>
module attributes {stable_mosaic.version = 11 : i64} {
  func.func @_dwconv_kernel(%arg0: i32, %arg1: i32, %arg2: memref<16x16x128xf32, #tpu.memory_space<vmem>>, %arg3: memref<9x128xf32, #tpu.memory_space<vmem>>, %arg4: memref<1x128xf32, #tpu.memory_space<vmem>>, %arg5: memref<16x16x128xf32, #tpu.memory_space<vmem>>) attributes {dimension_semantics = [#tpu.dimension_semantics<parallel>, #tpu.dimension_semantics<parallel>], iteration_bounds = array<i64: 2, 1>, scalar_prefetch = 0 : i64, scratch_operands = 0 : i64, tpu.core_type = #tpu.core_type<tc>, window_params = [{transform_indices = @transform_0, window_bounds = array<i64: 16, 16, 128>}, {transform_indices = @transform_1, window_bounds = array<i64: 9, 128>}, {transform_indices = @transform_2, window_bounds = array<i64: 1, 128>}, {transform_indices = @transform_3, window_bounds = array<i64: 16, 16, 128>}]} {
    %c0 = arith.constant 0 : index
    %c0_0 = arith.constant 0 : index
    %0 = vector.load %arg3[%c0, %c0_0] : memref<9x128xf32, #tpu.memory_space<vmem>>, vector<9x128xf32>
    %1 = vector.extract_strided_slice %0 {offsets = [0, 0], sizes = [1, 128], strides = [1, 1]} : vector<9x128xf32> to vector<1x128xf32>
    %2 = vector.shape_cast %1 : vector<1x128xf32> to vector<128xf32>
    %3 = vector.shape_cast %2 : vector<128xf32> to vector<1x128xf32>
    %4 = vector.shape_cast %3 : vector<1x128xf32> to vector<1x128xf32>
    %5 = vector.broadcast %4 : vector<1x128xf32> to vector<16x128xf32>
    %6 = vector.extract_strided_slice %0 {offsets = [1, 0], sizes = [1, 128], strides = [1, 1]} : vector<9x128xf32> to vector<1x128xf32>
    %7 = vector.shape_cast %6 : vector<1x128xf32> to vector<128xf32>
    %8 = vector.shape_cast %7 : vector<128xf32> to vector<1x128xf32>
    %9 = vector.shape_cast %8 : vector<1x128xf32> to vector<1x128xf32>
    %10 = vector.broadcast %9 : vector<1x128xf32> to vector<16x128xf32>
    %11 = vector.extract_strided_slice %0 {offsets = [2, 0], sizes = [1, 128], strides = [1, 1]} : vector<9x128xf32> to vector<1x128xf32>
    %12 = vector.shape_cast %11 : vector<1x128xf32> to vector<128xf32>
    %13 = vector.shape_cast %12 : vector<128xf32> to vector<1x128xf32>
    %14 = vector.shape_cast %13 : vector<1x128xf32> to vector<1x128xf32>
    %15 = vector.broadcast %14 : vector<1x128xf32> to vector<16x128xf32>
    %16 = vector.extract_strided_slice %0 {offsets = [3, 0], sizes = [1, 128], strides = [1, 1]} : vector<9x128xf32> to vector<1x128xf32>
    %17 = vector.shape_cast %16 : vector<1x128xf32> to vector<128xf32>
    %18 = vector.shape_cast %17 : vector<128xf32> to vector<1x128xf32>
    %19 = vector.shape_cast %18 : vector<1x128xf32> to vector<1x128xf32>
    %20 = vector.broadcast %19 : vector<1x128xf32> to vector<16x128xf32>
    %21 = vector.extract_strided_slice %0 {offsets = [4, 0], sizes = [1, 128], strides = [1, 1]} : vector<9x128xf32> to vector<1x128xf32>
    %22 = vector.shape_cast %21 : vector<1x128xf32> to vector<128xf32>
    %23 = vector.shape_cast %22 : vector<128xf32> to vector<1x128xf32>
    %24 = vector.shape_cast %23 : vector<1x128xf32> to vector<1x128xf32>
    %25 = vector.broadcast %24 : vector<1x128xf32> to vector<16x128xf32>
    %26 = vector.extract_strided_slice %0 {offsets = [5, 0], sizes = [1, 128], strides = [1, 1]} : vector<9x128xf32> to vector<1x128xf32>
    %27 = vector.shape_cast %26 : vector<1x128xf32> to vector<128xf32>
    %28 = vector.shape_cast %27 : vector<128xf32> to vector<1x128xf32>
    %29 = vector.shape_cast %28 : vector<1x128xf32> to vector<1x128xf32>
    %30 = vector.broadcast %29 : vector<1x128xf32> to vector<16x128xf32>
    %31 = vector.extract_strided_slice %0 {offsets = [6, 0], sizes = [1, 128], strides = [1, 1]} : vector<9x128xf32> to vector<1x128xf32>
    %32 = vector.shape_cast %31 : vector<1x128xf32> to vector<128xf32>
    %33 = vector.shape_cast %32 : vector<128xf32> to vector<1x128xf32>
    %34 = vector.shape_cast %33 : vector<1x128xf32> to vector<1x128xf32>
    %35 = vector.broadcast %34 : vector<1x128xf32> to vector<16x128xf32>
    %36 = vector.extract_strided_slice %0 {offsets = [7, 0], sizes = [1, 128], strides = [1, 1]} : vector<9x128xf32> to vector<1x128xf32>
    %37 = vector.shape_cast %36 : vector<1x128xf32> to vector<128xf32>
    %38 = vector.shape_cast %37 : vector<128xf32> to vector<1x128xf32>
    %39 = vector.shape_cast %38 : vector<1x128xf32> to vector<1x128xf32>
    %40 = vector.broadcast %39 : vector<1x128xf32> to vector<16x128xf32>
    %41 = vector.extract_strided_slice %0 {offsets = [8, 0], sizes = [1, 128], strides = [1, 1]} : vector<9x128xf32> to vector<1x128xf32>
    %42 = vector.shape_cast %41 : vector<1x128xf32> to vector<128xf32>
    %43 = vector.shape_cast %42 : vector<128xf32> to vector<1x128xf32>
    %44 = vector.shape_cast %43 : vector<1x128xf32> to vector<1x128xf32>
    %45 = vector.broadcast %44 : vector<1x128xf32> to vector<16x128xf32>
    %c0_1 = arith.constant 0 : index
    %c0_2 = arith.constant 0 : index
    %46 = vector.load %arg4[%c0_1, %c0_2] : memref<1x128xf32, #tpu.memory_space<vmem>>, vector<1x128xf32>
    %47 = vector.shape_cast %46 : vector<1x128xf32> to vector<1x128xf32>
    %48 = vector.broadcast %47 : vector<1x128xf32> to vector<16x128xf32>
    %49 = tpu.iota {dimensions = array<i32: 0>} : vector<16x128xi32>
    %c1_i32 = arith.constant 1 : i32
    %50 = vector.broadcast %c1_i32 : i32 to vector<16x128xi32>
    %51 = arith.cmpi sge, %49, %50 : vector<16x128xi32>
    %c14_i32 = arith.constant 14 : i32
    %52 = vector.broadcast %c14_i32 : i32 to vector<16x128xi32>
    %53 = arith.cmpi sle, %49, %52 : vector<16x128xi32>
    %cst = arith.constant 0.000000e+00 : f32
    %54 = vector.broadcast %cst : f32 to vector<16x128xf32>
    %c0_3 = arith.constant 0 : index
    %c0_4 = arith.constant 0 : index
    %c0_5 = arith.constant 0 : index
    %55 = vector.load %arg2[%c0_3, %c0_4, %c0_5] : memref<16x16x128xf32, #tpu.memory_space<vmem>>, vector<1x16x128xf32>
    %56 = vector.shape_cast %55 : vector<1x16x128xf32> to vector<16x128xf32>
    %c1 = arith.constant 1 : index
    %c0_6 = arith.constant 0 : index
    %c0_7 = arith.constant 0 : index
    %57 = vector.load %arg2[%c1, %c0_6, %c0_7] : memref<16x16x128xf32, #tpu.memory_space<vmem>>, vector<1x16x128xf32>
    %58 = vector.shape_cast %57 : vector<1x16x128xf32> to vector<16x128xf32>
    %59 = arith.mulf %56, %20 : vector<16x128xf32>
    %60 = arith.mulf %58, %35 : vector<16x128xf32>
    %61 = arith.addf %59, %60 : vector<16x128xf32>
    %62 = arith.mulf %56, %25 : vector<16x128xf32>
    %63 = arith.mulf %58, %40 : vector<16x128xf32>
    %64 = arith.addf %62, %63 : vector<16x128xf32>
    %65 = arith.mulf %56, %30 : vector<16x128xf32>
    %66 = arith.mulf %58, %45 : vector<16x128xf32>
    %67 = arith.addf %65, %66 : vector<16x128xf32>
    %c1_i32_8 = arith.constant 1 : i32
    %68 = tpu.dynamic_rotate %61 by %c1_i32_8 dim 0 : vector<16x128xf32>, i32 -> vector<16x128xf32>
    %69 = arith.select %51, %68, %54 : vector<16x128xi1>, vector<16x128xf32>
    %c15_i32 = arith.constant 15 : i32
    %70 = tpu.dynamic_rotate %67 by %c15_i32 dim 0 : vector<16x128xf32>, i32 -> vector<16x128xf32>
    %71 = arith.select %53, %70, %54 : vector<16x128xi1>, vector<16x128xf32>
    %72 = arith.addf %48, %64 : vector<16x128xf32>
    %73 = arith.addf %72, %69 : vector<16x128xf32>
    %74 = arith.addf %73, %71 : vector<16x128xf32>
    %c0_9 = arith.constant 0 : index
    %c0_10 = arith.constant 0 : index
    %c0_11 = arith.constant 0 : index
    %75 = vector.load %arg5[%c0_9, %c0_10, %c0_11] : memref<16x16x128xf32, #tpu.memory_space<vmem>>, vector<1x16x128xf32>
    %76 = vector.shape_cast %75 : vector<1x16x128xf32> to vector<16x128xf32>
    %77 = vector.shape_cast %74 : vector<16x128xf32> to vector<1x16x128xf32>
    tpu.vector_store %arg5[%c0_9, %c0_10, %c0_11], %77 {strides = array<i32>} : memref<16x16x128xf32, #tpu.memory_space<vmem>>, vector<1x16x128xf32>,
    %c1_i32_12 = arith.constant 1 : i32
    %c0_i32 = arith.constant 0 : i32
    %78 = arith.addi %c0_i32, %c1_i32_12 : i32
    %c1_i32_13 = arith.constant 1 : i32
    %79 = arith.subi %78, %c1_i32_13 : i32
    %80 = arith.index_cast %79 : i32 to index
    %c0_14 = arith.constant 0 : index
    %c0_15 = arith.constant 0 : index
    %81 = vector.load %arg2[%80, %c0_14, %c0_15] : memref<16x16x128xf32, #tpu.memory_space<vmem>>, vector<1x16x128xf32>
    %82 = vector.shape_cast %81 : vector<1x16x128xf32> to vector<16x128xf32>
    %c0_i32_16 = arith.constant 0 : i32
    %83 = arith.addi %c0_i32_16, %c1_i32_12 : i32
    %84 = arith.index_cast %83 : i32 to index
    %c0_17 = arith.constant 0 : index
    %c0_18 = arith.constant 0 : index
    %85 = vector.load %arg2[%84, %c0_17, %c0_18] : memref<16x16x128xf32, #tpu.memory_space<vmem>>, vector<1x16x128xf32>
    %86 = vector.shape_cast %85 : vector<1x16x128xf32> to vector<16x128xf32>
    %c0_i32_19 = arith.constant 0 : i32
    %87 = arith.addi %c0_i32_19, %c1_i32_12 : i32
    %c1_i32_20 = arith.constant 1 : i32
    %88 = arith.addi %87, %c1_i32_20 : i32
    %89 = arith.index_cast %88 : i32 to index
    %c0_21 = arith.constant 0 : index
    %c0_22 = arith.constant 0 : index
    %90 = vector.load %arg2[%89, %c0_21, %c0_22] : memref<16x16x128xf32, #tpu.memory_space<vmem>>, vector<1x16x128xf32>
    %91 = vector.shape_cast %90 : vector<1x16x128xf32> to vector<16x128xf32>
    %92 = arith.mulf %82, %5 : vector<16x128xf32>
    %93 = arith.mulf %86, %20 : vector<16x128xf32>
    %94 = arith.addf %92, %93 : vector<16x128xf32>
    %95 = arith.mulf %91, %35 : vector<16x128xf32>
    %96 = arith.addf %94, %95 : vector<16x128xf32>
    %97 = arith.mulf %82, %10 : vector<16x128xf32>
    %98 = arith.mulf %86, %25 : vector<16x128xf32>
    %99 = arith.addf %97, %98 : vector<16x128xf32>
    %100 = arith.mulf %91, %40 : vector<16x128xf32>
    %101 = arith.addf %99, %100 : vector<16x128xf32>
    %102 = arith.mulf %82, %15 : vector<16x128xf32>
    %103 = arith.mulf %86, %30 : vector<16x128xf32>
    %104 = arith.addf %102, %103 : vector<16x128xf32>
    %105 = arith.mulf %91, %45 : vector<16x128xf32>
    %106 = arith.addf %104, %105 : vector<16x128xf32>
    %c1_i32_23 = arith.constant 1 : i32
    %107 = tpu.dynamic_rotate %96 by %c1_i32_23 dim 0 : vector<16x128xf32>, i32 -> vector<16x128xf32>
    %108 = arith.select %51, %107, %54 : vector<16x128xi1>, vector<16x128xf32>
    %c15_i32_24 = arith.constant 15 : i32
    %109 = tpu.dynamic_rotate %106 by %c15_i32_24 dim 0 : vector<16x128xf32>, i32 -> vector<16x128xf32>
    %110 = arith.select %53, %109, %54 : vector<16x128xi1>, vector<16x128xf32>
    %111 = arith.addf %48, %101 : vector<16x128xf32>
    %112 = arith.addf %111, %108 : vector<16x128xf32>
    %113 = arith.addf %112, %110 : vector<16x128xf32>
    %c0_i32_25 = arith.constant 0 : i32
    %114 = arith.addi %c0_i32_25, %c1_i32_12 : i32
    %115 = arith.index_cast %114 : i32 to index
    %c0_26 = arith.constant 0 : index
    %c0_27 = arith.constant 0 : index
    %116 = vector.load %arg5[%115, %c0_26, %c0_27] : memref<16x16x128xf32, #tpu.memory_space<vmem>>, vector<1x16x128xf32>
    %117 = vector.shape_cast %116 : vector<1x16x128xf32> to vector<16x128xf32>
    %118 = vector.shape_cast %113 : vector<16x128xf32> to vector<1x16x128xf32>
    tpu.vector_store %arg5[%115, %c0_26, %c0_27], %118 {strides = array<i32>} : memref<16x16x128xf32, #tpu.memory_space<vmem>>, vector<1x16x128xf32>,
    %c2_i32 = arith.constant 2 : i32
    %c0_i32_28 = arith.constant 0 : i32
    %119 = arith.addi %c0_i32_28, %c2_i32 : i32
    %c1_i32_29 = arith.constant 1 : i32
    %120 = arith.subi %119, %c1_i32_29 : i32
    %121 = arith.index_cast %120 : i32 to index
    %c0_30 = arith.constant 0 : index
    %c0_31 = arith.constant 0 : index
    %122 = vector.load %arg2[%121, %c0_30, %c0_31] : memref<16x16x128xf32, #tpu.memory_space<vmem>>, vector<1x16x128xf32>
    %123 = vector.shape_cast %122 : vector<1x16x128xf32> to vector<16x128xf32>
    %c0_i32_32 = arith.constant 0 : i32
    %124 = arith.addi %c0_i32_32, %c2_i32 : i32
    %125 = arith.index_cast %124 : i32 to index
    %c0_33 = arith.constant 0 : index
    %c0_34 = arith.constant 0 : index
    %126 = vector.load %arg2[%125, %c0_33, %c0_34] : memref<16x16x128xf32, #tpu.memory_space<vmem>>, vector<1x16x128xf32>
    %127 = vector.shape_cast %126 : vector<1x16x128xf32> to vector<16x128xf32>
    %c0_i32_35 = arith.constant 0 : i32
    %128 = arith.addi %c0_i32_35, %c2_i32 : i32
    %c1_i32_36 = arith.constant 1 : i32
    %129 = arith.addi %128, %c1_i32_36 : i32
    %130 = arith.index_cast %129 : i32 to index
    %c0_37 = arith.constant 0 : index
    %c0_38 = arith.constant 0 : index
    %131 = vector.load %arg2[%130, %c0_37, %c0_38] : memref<16x16x128xf32, #tpu.memory_space<vmem>>, vector<1x16x128xf32>
    %132 = vector.shape_cast %131 : vector<1x16x128xf32> to vector<16x128xf32>
    %133 = arith.mulf %123, %5 : vector<16x128xf32>
    %134 = arith.mulf %127, %20 : vector<16x128xf32>
    %135 = arith.addf %133, %134 : vector<16x128xf32>
    %136 = arith.mulf %132, %35 : vector<16x128xf32>
    %137 = arith.addf %135, %136 : vector<16x128xf32>
    %138 = arith.mulf %123, %10 : vector<16x128xf32>
    %139 = arith.mulf %127, %25 : vector<16x128xf32>
    %140 = arith.addf %138, %139 : vector<16x128xf32>
    %141 = arith.mulf %132, %40 : vector<16x128xf32>
    %142 = arith.addf %140, %141 : vector<16x128xf32>
    %143 = arith.mulf %123, %15 : vector<16x128xf32>
    %144 = arith.mulf %127, %30 : vector<16x128xf32>
    %145 = arith.addf %143, %144 : vector<16x128xf32>
    %146 = arith.mulf %132, %45 : vector<16x128xf32>
    %147 = arith.addf %145, %146 : vector<16x128xf32>
    %c1_i32_39 = arith.constant 1 : i32
    %148 = tpu.dynamic_rotate %137 by %c1_i32_39 dim 0 : vector<16x128xf32>, i32 -> vector<16x128xf32>
    %149 = arith.select %51, %148, %54 : vector<16x128xi1>, vector<16x128xf32>
    %c15_i32_40 = arith.constant 15 : i32
    %150 = tpu.dynamic_rotate %147 by %c15_i32_40 dim 0 : vector<16x128xf32>, i32 -> vector<16x128xf32>
    %151 = arith.select %53, %150, %54 : vector<16x128xi1>, vector<16x128xf32>
    %152 = arith.addf %48, %142 : vector<16x128xf32>
    %153 = arith.addf %152, %149 : vector<16x128xf32>
    %154 = arith.addf %153, %151 : vector<16x128xf32>
    %c0_i32_41 = arith.constant 0 : i32
    %155 = arith.addi %c0_i32_41, %c2_i32 : i32
    %156 = arith.index_cast %155 : i32 to index
    %c0_42 = arith.constant 0 : index
    %c0_43 = arith.constant 0 : index
    %157 = vector.load %arg5[%156, %c0_42, %c0_43] : memref<16x16x128xf32, #tpu.memory_space<vmem>>, vector<1x16x128xf32>
    %158 = vector.shape_cast %157 : vector<1x16x128xf32> to vector<16x128xf32>
    %159 = vector.shape_cast %154 : vector<16x128xf32> to vector<1x16x128xf32>
    tpu.vector_store %arg5[%156, %c0_42, %c0_43], %159 {strides = array<i32>} : memref<16x16x128xf32, #tpu.memory_space<vmem>>, vector<1x16x128xf32>,
    %c3_i32 = arith.constant 3 : i32
    %c0_i32_44 = arith.constant 0 : i32
    %160 = arith.addi %c0_i32_44, %c3_i32 : i32
    %c1_i32_45 = arith.constant 1 : i32
    %161 = arith.subi %160, %c1_i32_45 : i32
    %162 = arith.index_cast %161 : i32 to index
    %c0_46 = arith.constant 0 : index
    %c0_47 = arith.constant 0 : index
    %163 = vector.load %arg2[%162, %c0_46, %c0_47] : memref<16x16x128xf32, #tpu.memory_space<vmem>>, vector<1x16x128xf32>
    %164 = vector.shape_cast %163 : vector<1x16x128xf32> to vector<16x128xf32>
    %c0_i32_48 = arith.constant 0 : i32
    %165 = arith.addi %c0_i32_48, %c3_i32 : i32
    %166 = arith.index_cast %165 : i32 to index
    %c0_49 = arith.constant 0 : index
    %c0_50 = arith.constant 0 : index
    %167 = vector.load %arg2[%166, %c0_49, %c0_50] : memref<16x16x128xf32, #tpu.memory_space<vmem>>, vector<1x16x128xf32>
    %168 = vector.shape_cast %167 : vector<1x16x128xf32> to vector<16x128xf32>
    %c0_i32_51 = arith.constant 0 : i32
    %169 = arith.addi %c0_i32_51, %c3_i32 : i32
    %c1_i32_52 = arith.constant 1 : i32
    %170 = arith.addi %169, %c1_i32_52 : i32
    %171 = arith.index_cast %170 : i32 to index
    %c0_53 = arith.constant 0 : index
    %c0_54 = arith.constant 0 : index
    %172 = vector.load %arg2[%171, %c0_53, %c0_54] : memref<16x16x128xf32, #tpu.memory_space<vmem>>, vector<1x16x128xf32>
    %173 = vector.shape_cast %172 : vector<1x16x128xf32> to vector<16x128xf32>
    %174 = arith.mulf %164, %5 : vector<16x128xf32>
    %175 = arith.mulf %168, %20 : vector<16x128xf32>
    %176 = arith.addf %174, %175 : vector<16x128xf32>
    %177 = arith.mulf %173, %35 : vector<16x128xf32>
    %178 = arith.addf %176, %177 : vector<16x128xf32>
    %179 = arith.mulf %164, %10 : vector<16x128xf32>
    %180 = arith.mulf %168, %25 : vector<16x128xf32>
    %181 = arith.addf %179, %180 : vector<16x128xf32>
    %182 = arith.mulf %173, %40 : vector<16x128xf32>
    %183 = arith.addf %181, %182 : vector<16x128xf32>
    %184 = arith.mulf %164, %15 : vector<16x128xf32>
    %185 = arith.mulf %168, %30 : vector<16x128xf32>
    %186 = arith.addf %184, %185 : vector<16x128xf32>
    %187 = arith.mulf %173, %45 : vector<16x128xf32>
    %188 = arith.addf %186, %187 : vector<16x128xf32>
    %c1_i32_55 = arith.constant 1 : i32
    %189 = tpu.dynamic_rotate %178 by %c1_i32_55 dim 0 : vector<16x128xf32>, i32 -> vector<16x128xf32>
    %190 = arith.select %51, %189, %54 : vector<16x128xi1>, vector<16x128xf32>
    %c15_i32_56 = arith.constant 15 : i32
    %191 = tpu.dynamic_rotate %188 by %c15_i32_56 dim 0 : vector<16x128xf32>, i32 -> vector<16x128xf32>
    %192 = arith.select %53, %191, %54 : vector<16x128xi1>, vector<16x128xf32>
    %193 = arith.addf %48, %183 : vector<16x128xf32>
    %194 = arith.addf %193, %190 : vector<16x128xf32>
    %195 = arith.addf %194, %192 : vector<16x128xf32>
    %c0_i32_57 = arith.constant 0 : i32
    %196 = arith.addi %c0_i32_57, %c3_i32 : i32
    %197 = arith.index_cast %196 : i32 to index
    %c0_58 = arith.constant 0 : index
    %c0_59 = arith.constant 0 : index
    %198 = vector.load %arg5[%197, %c0_58, %c0_59] : memref<16x16x128xf32, #tpu.memory_space<vmem>>, vector<1x16x128xf32>
    %199 = vector.shape_cast %198 : vector<1x16x128xf32> to vector<16x128xf32>
    %200 = vector.shape_cast %195 : vector<16x128xf32> to vector<1x16x128xf32>
    tpu.vector_store %arg5[%197, %c0_58, %c0_59], %200 {strides = array<i32>} : memref<16x16x128xf32, #tpu.memory_space<vmem>>, vector<1x16x128xf32>,
    %c4_i32 = arith.constant 4 : i32
    %c0_i32_60 = arith.constant 0 : i32
    %201 = arith.addi %c0_i32_60, %c4_i32 : i32
    %c1_i32_61 = arith.constant 1 : i32
    %202 = arith.subi %201, %c1_i32_61 : i32
    %203 = arith.index_cast %202 : i32 to index
    %c0_62 = arith.constant 0 : index
    %c0_63 = arith.constant 0 : index
    %204 = vector.load %arg2[%203, %c0_62, %c0_63] : memref<16x16x128xf32, #tpu.memory_space<vmem>>, vector<1x16x128xf32>
    %205 = vector.shape_cast %204 : vector<1x16x128xf32> to vector<16x128xf32>
    %c0_i32_64 = arith.constant 0 : i32
    %206 = arith.addi %c0_i32_64, %c4_i32 : i32
    %207 = arith.index_cast %206 : i32 to index
    %c0_65 = arith.constant 0 : index
    %c0_66 = arith.constant 0 : index
    %208 = vector.load %arg2[%207, %c0_65, %c0_66] : memref<16x16x128xf32, #tpu.memory_space<vmem>>, vector<1x16x128xf32>
    %209 = vector.shape_cast %208 : vector<1x16x128xf32> to vector<16x128xf32>
    %c0_i32_67 = arith.constant 0 : i32
    %210 = arith.addi %c0_i32_67, %c4_i32 : i32
    %c1_i32_68 = arith.constant 1 : i32
    %211 = arith.addi %210, %c1_i32_68 : i32
    %212 = arith.index_cast %211 : i32 to index
    %c0_69 = arith.constant 0 : index
    %c0_70 = arith.constant 0 : index
    %213 = vector.load %arg2[%212, %c0_69, %c0_70] : memref<16x16x128xf32, #tpu.memory_space<vmem>>, vector<1x16x128xf32>
    %214 = vector.shape_cast %213 : vector<1x16x128xf32> to vector<16x128xf32>
    %215 = arith.mulf %205, %5 : vector<16x128xf32>
    %216 = arith.mulf %209, %20 : vector<16x128xf32>
    %217 = arith.addf %215, %216 : vector<16x128xf32>
    %218 = arith.mulf %214, %35 : vector<16x128xf32>
    %219 = arith.addf %217, %218 : vector<16x128xf32>
    %220 = arith.mulf %205, %10 : vector<16x128xf32>
    %221 = arith.mulf %209, %25 : vector<16x128xf32>
    %222 = arith.addf %220, %221 : vector<16x128xf32>
    %223 = arith.mulf %214, %40 : vector<16x128xf32>
    %224 = arith.addf %222, %223 : vector<16x128xf32>
    %225 = arith.mulf %205, %15 : vector<16x128xf32>
    %226 = arith.mulf %209, %30 : vector<16x128xf32>
    %227 = arith.addf %225, %226 : vector<16x128xf32>
    %228 = arith.mulf %214, %45 : vector<16x128xf32>
    %229 = arith.addf %227, %228 : vector<16x128xf32>
    %c1_i32_71 = arith.constant 1 : i32
    %230 = tpu.dynamic_rotate %219 by %c1_i32_71 dim 0 : vector<16x128xf32>, i32 -> vector<16x128xf32>
    %231 = arith.select %51, %230, %54 : vector<16x128xi1>, vector<16x128xf32>
    %c15_i32_72 = arith.constant 15 : i32
    %232 = tpu.dynamic_rotate %229 by %c15_i32_72 dim 0 : vector<16x128xf32>, i32 -> vector<16x128xf32>
    %233 = arith.select %53, %232, %54 : vector<16x128xi1>, vector<16x128xf32>
    %234 = arith.addf %48, %224 : vector<16x128xf32>
    %235 = arith.addf %234, %231 : vector<16x128xf32>
    %236 = arith.addf %235, %233 : vector<16x128xf32>
    %c0_i32_73 = arith.constant 0 : i32
    %237 = arith.addi %c0_i32_73, %c4_i32 : i32
    %238 = arith.index_cast %237 : i32 to index
    %c0_74 = arith.constant 0 : index
    %c0_75 = arith.constant 0 : index
    %239 = vector.load %arg5[%238, %c0_74, %c0_75] : memref<16x16x128xf32, #tpu.memory_space<vmem>>, vector<1x16x128xf32>
    %240 = vector.shape_cast %239 : vector<1x16x128xf32> to vector<16x128xf32>
    %241 = vector.shape_cast %236 : vector<16x128xf32> to vector<1x16x128xf32>
    tpu.vector_store %arg5[%238, %c0_74, %c0_75], %241 {strides = array<i32>} : memref<16x16x128xf32, #tpu.memory_space<vmem>>, vector<1x16x128xf32>,
    %c5_i32 = arith.constant 5 : i32
    %c0_i32_76 = arith.constant 0 : i32
    %242 = arith.addi %c0_i32_76, %c5_i32 : i32
    %c1_i32_77 = arith.constant 1 : i32
    %243 = arith.subi %242, %c1_i32_77 : i32
    %244 = arith.index_cast %243 : i32 to index
    %c0_78 = arith.constant 0 : index
    %c0_79 = arith.constant 0 : index
    %245 = vector.load %arg2[%244, %c0_78, %c0_79] : memref<16x16x128xf32, #tpu.memory_space<vmem>>, vector<1x16x128xf32>
    %246 = vector.shape_cast %245 : vector<1x16x128xf32> to vector<16x128xf32>
    %c0_i32_80 = arith.constant 0 : i32
    %247 = arith.addi %c0_i32_80, %c5_i32 : i32
    %248 = arith.index_cast %247 : i32 to index
    %c0_81 = arith.constant 0 : index
    %c0_82 = arith.constant 0 : index
    %249 = vector.load %arg2[%248, %c0_81, %c0_82] : memref<16x16x128xf32, #tpu.memory_space<vmem>>, vector<1x16x128xf32>
    %250 = vector.shape_cast %249 : vector<1x16x128xf32> to vector<16x128xf32>
    %c0_i32_83 = arith.constant 0 : i32
    %251 = arith.addi %c0_i32_83, %c5_i32 : i32
    %c1_i32_84 = arith.constant 1 : i32
    %252 = arith.addi %251, %c1_i32_84 : i32
    %253 = arith.index_cast %252 : i32 to index
    %c0_85 = arith.constant 0 : index
    %c0_86 = arith.constant 0 : index
    %254 = vector.load %arg2[%253, %c0_85, %c0_86] : memref<16x16x128xf32, #tpu.memory_space<vmem>>, vector<1x16x128xf32>
    %255 = vector.shape_cast %254 : vector<1x16x128xf32> to vector<16x128xf32>
    %256 = arith.mulf %246, %5 : vector<16x128xf32>
    %257 = arith.mulf %250, %20 : vector<16x128xf32>
    %258 = arith.addf %256, %257 : vector<16x128xf32>
    %259 = arith.mulf %255, %35 : vector<16x128xf32>
    %260 = arith.addf %258, %259 : vector<16x128xf32>
    %261 = arith.mulf %246, %10 : vector<16x128xf32>
    %262 = arith.mulf %250, %25 : vector<16x128xf32>
    %263 = arith.addf %261, %262 : vector<16x128xf32>
    %264 = arith.mulf %255, %40 : vector<16x128xf32>
    %265 = arith.addf %263, %264 : vector<16x128xf32>
    %266 = arith.mulf %246, %15 : vector<16x128xf32>
    %267 = arith.mulf %250, %30 : vector<16x128xf32>
    %268 = arith.addf %266, %267 : vector<16x128xf32>
    %269 = arith.mulf %255, %45 : vector<16x128xf32>
    %270 = arith.addf %268, %269 : vector<16x128xf32>
    %c1_i32_87 = arith.constant 1 : i32
    %271 = tpu.dynamic_rotate %260 by %c1_i32_87 dim 0 : vector<16x128xf32>, i32 -> vector<16x128xf32>
    %272 = arith.select %51, %271, %54 : vector<16x128xi1>, vector<16x128xf32>
    %c15_i32_88 = arith.constant 15 : i32
    %273 = tpu.dynamic_rotate %270 by %c15_i32_88 dim 0 : vector<16x128xf32>, i32 -> vector<16x128xf32>
    %274 = arith.select %53, %273, %54 : vector<16x128xi1>, vector<16x128xf32>
    %275 = arith.addf %48, %265 : vector<16x128xf32>
    %276 = arith.addf %275, %272 : vector<16x128xf32>
    %277 = arith.addf %276, %274 : vector<16x128xf32>
    %c0_i32_89 = arith.constant 0 : i32
    %278 = arith.addi %c0_i32_89, %c5_i32 : i32
    %279 = arith.index_cast %278 : i32 to index
    %c0_90 = arith.constant 0 : index
    %c0_91 = arith.constant 0 : index
    %280 = vector.load %arg5[%279, %c0_90, %c0_91] : memref<16x16x128xf32, #tpu.memory_space<vmem>>, vector<1x16x128xf32>
    %281 = vector.shape_cast %280 : vector<1x16x128xf32> to vector<16x128xf32>
    %282 = vector.shape_cast %277 : vector<16x128xf32> to vector<1x16x128xf32>
    tpu.vector_store %arg5[%279, %c0_90, %c0_91], %282 {strides = array<i32>} : memref<16x16x128xf32, #tpu.memory_space<vmem>>, vector<1x16x128xf32>,
    %c6_i32 = arith.constant 6 : i32
    %c0_i32_92 = arith.constant 0 : i32
    %283 = arith.addi %c0_i32_92, %c6_i32 : i32
    %c1_i32_93 = arith.constant 1 : i32
    %284 = arith.subi %283, %c1_i32_93 : i32
    %285 = arith.index_cast %284 : i32 to index
    %c0_94 = arith.constant 0 : index
    %c0_95 = arith.constant 0 : index
    %286 = vector.load %arg2[%285, %c0_94, %c0_95] : memref<16x16x128xf32, #tpu.memory_space<vmem>>, vector<1x16x128xf32>
    %287 = vector.shape_cast %286 : vector<1x16x128xf32> to vector<16x128xf32>
    %c0_i32_96 = arith.constant 0 : i32
    %288 = arith.addi %c0_i32_96, %c6_i32 : i32
    %289 = arith.index_cast %288 : i32 to index
    %c0_97 = arith.constant 0 : index
    %c0_98 = arith.constant 0 : index
    %290 = vector.load %arg2[%289, %c0_97, %c0_98] : memref<16x16x128xf32, #tpu.memory_space<vmem>>, vector<1x16x128xf32>
    %291 = vector.shape_cast %290 : vector<1x16x128xf32> to vector<16x128xf32>
    %c0_i32_99 = arith.constant 0 : i32
    %292 = arith.addi %c0_i32_99, %c6_i32 : i32
    %c1_i32_100 = arith.constant 1 : i32
    %293 = arith.addi %292, %c1_i32_100 : i32
    %294 = arith.index_cast %293 : i32 to index
    %c0_101 = arith.constant 0 : index
    %c0_102 = arith.constant 0 : index
    %295 = vector.load %arg2[%294, %c0_101, %c0_102] : memref<16x16x128xf32, #tpu.memory_space<vmem>>, vector<1x16x128xf32>
    %296 = vector.shape_cast %295 : vector<1x16x128xf32> to vector<16x128xf32>
    %297 = arith.mulf %287, %5 : vector<16x128xf32>
    %298 = arith.mulf %291, %20 : vector<16x128xf32>
    %299 = arith.addf %297, %298 : vector<16x128xf32>
    %300 = arith.mulf %296, %35 : vector<16x128xf32>
    %301 = arith.addf %299, %300 : vector<16x128xf32>
    %302 = arith.mulf %287, %10 : vector<16x128xf32>
    %303 = arith.mulf %291, %25 : vector<16x128xf32>
    %304 = arith.addf %302, %303 : vector<16x128xf32>
    %305 = arith.mulf %296, %40 : vector<16x128xf32>
    %306 = arith.addf %304, %305 : vector<16x128xf32>
    %307 = arith.mulf %287, %15 : vector<16x128xf32>
    %308 = arith.mulf %291, %30 : vector<16x128xf32>
    %309 = arith.addf %307, %308 : vector<16x128xf32>
    %310 = arith.mulf %296, %45 : vector<16x128xf32>
    %311 = arith.addf %309, %310 : vector<16x128xf32>
    %c1_i32_103 = arith.constant 1 : i32
    %312 = tpu.dynamic_rotate %301 by %c1_i32_103 dim 0 : vector<16x128xf32>, i32 -> vector<16x128xf32>
    %313 = arith.select %51, %312, %54 : vector<16x128xi1>, vector<16x128xf32>
    %c15_i32_104 = arith.constant 15 : i32
    %314 = tpu.dynamic_rotate %311 by %c15_i32_104 dim 0 : vector<16x128xf32>, i32 -> vector<16x128xf32>
    %315 = arith.select %53, %314, %54 : vector<16x128xi1>, vector<16x128xf32>
    %316 = arith.addf %48, %306 : vector<16x128xf32>
    %317 = arith.addf %316, %313 : vector<16x128xf32>
    %318 = arith.addf %317, %315 : vector<16x128xf32>
    %c0_i32_105 = arith.constant 0 : i32
    %319 = arith.addi %c0_i32_105, %c6_i32 : i32
    %320 = arith.index_cast %319 : i32 to index
    %c0_106 = arith.constant 0 : index
    %c0_107 = arith.constant 0 : index
    %321 = vector.load %arg5[%320, %c0_106, %c0_107] : memref<16x16x128xf32, #tpu.memory_space<vmem>>, vector<1x16x128xf32>
    %322 = vector.shape_cast %321 : vector<1x16x128xf32> to vector<16x128xf32>
    %323 = vector.shape_cast %318 : vector<16x128xf32> to vector<1x16x128xf32>
    tpu.vector_store %arg5[%320, %c0_106, %c0_107], %323 {strides = array<i32>} : memref<16x16x128xf32, #tpu.memory_space<vmem>>, vector<1x16x128xf32>,
    %c7_i32 = arith.constant 7 : i32
    %c0_i32_108 = arith.constant 0 : i32
    %324 = arith.addi %c0_i32_108, %c7_i32 : i32
    %c1_i32_109 = arith.constant 1 : i32
    %325 = arith.subi %324, %c1_i32_109 : i32
    %326 = arith.index_cast %325 : i32 to index
    %c0_110 = arith.constant 0 : index
    %c0_111 = arith.constant 0 : index
    %327 = vector.load %arg2[%326, %c0_110, %c0_111] : memref<16x16x128xf32, #tpu.memory_space<vmem>>, vector<1x16x128xf32>
    %328 = vector.shape_cast %327 : vector<1x16x128xf32> to vector<16x128xf32>
    %c0_i32_112 = arith.constant 0 : i32
    %329 = arith.addi %c0_i32_112, %c7_i32 : i32
    %330 = arith.index_cast %329 : i32 to index
    %c0_113 = arith.constant 0 : index
    %c0_114 = arith.constant 0 : index
    %331 = vector.load %arg2[%330, %c0_113, %c0_114] : memref<16x16x128xf32, #tpu.memory_space<vmem>>, vector<1x16x128xf32>
    %332 = vector.shape_cast %331 : vector<1x16x128xf32> to vector<16x128xf32>
    %c0_i32_115 = arith.constant 0 : i32
    %333 = arith.addi %c0_i32_115, %c7_i32 : i32
    %c1_i32_116 = arith.constant 1 : i32
    %334 = arith.addi %333, %c1_i32_116 : i32
    %335 = arith.index_cast %334 : i32 to index
    %c0_117 = arith.constant 0 : index
    %c0_118 = arith.constant 0 : index
    %336 = vector.load %arg2[%335, %c0_117, %c0_118] : memref<16x16x128xf32, #tpu.memory_space<vmem>>, vector<1x16x128xf32>
    %337 = vector.shape_cast %336 : vector<1x16x128xf32> to vector<16x128xf32>
    %338 = arith.mulf %328, %5 : vector<16x128xf32>
    %339 = arith.mulf %332, %20 : vector<16x128xf32>
    %340 = arith.addf %338, %339 : vector<16x128xf32>
    %341 = arith.mulf %337, %35 : vector<16x128xf32>
    %342 = arith.addf %340, %341 : vector<16x128xf32>
    %343 = arith.mulf %328, %10 : vector<16x128xf32>
    %344 = arith.mulf %332, %25 : vector<16x128xf32>
    %345 = arith.addf %343, %344 : vector<16x128xf32>
    %346 = arith.mulf %337, %40 : vector<16x128xf32>
    %347 = arith.addf %345, %346 : vector<16x128xf32>
    %348 = arith.mulf %328, %15 : vector<16x128xf32>
    %349 = arith.mulf %332, %30 : vector<16x128xf32>
    %350 = arith.addf %348, %349 : vector<16x128xf32>
    %351 = arith.mulf %337, %45 : vector<16x128xf32>
    %352 = arith.addf %350, %351 : vector<16x128xf32>
    %c1_i32_119 = arith.constant 1 : i32
    %353 = tpu.dynamic_rotate %342 by %c1_i32_119 dim 0 : vector<16x128xf32>, i32 -> vector<16x128xf32>
    %354 = arith.select %51, %353, %54 : vector<16x128xi1>, vector<16x128xf32>
    %c15_i32_120 = arith.constant 15 : i32
    %355 = tpu.dynamic_rotate %352 by %c15_i32_120 dim 0 : vector<16x128xf32>, i32 -> vector<16x128xf32>
    %356 = arith.select %53, %355, %54 : vector<16x128xi1>, vector<16x128xf32>
    %357 = arith.addf %48, %347 : vector<16x128xf32>
    %358 = arith.addf %357, %354 : vector<16x128xf32>
    %359 = arith.addf %358, %356 : vector<16x128xf32>
    %c0_i32_121 = arith.constant 0 : i32
    %360 = arith.addi %c0_i32_121, %c7_i32 : i32
    %361 = arith.index_cast %360 : i32 to index
    %c0_122 = arith.constant 0 : index
    %c0_123 = arith.constant 0 : index
    %362 = vector.load %arg5[%361, %c0_122, %c0_123] : memref<16x16x128xf32, #tpu.memory_space<vmem>>, vector<1x16x128xf32>
    %363 = vector.shape_cast %362 : vector<1x16x128xf32> to vector<16x128xf32>
    %364 = vector.shape_cast %359 : vector<16x128xf32> to vector<1x16x128xf32>
    tpu.vector_store %arg5[%361, %c0_122, %c0_123], %364 {strides = array<i32>} : memref<16x16x128xf32, #tpu.memory_space<vmem>>, vector<1x16x128xf32>,
    %c8_i32 = arith.constant 8 : i32
    %c0_i32_124 = arith.constant 0 : i32
    %365 = arith.addi %c0_i32_124, %c8_i32 : i32
    %c1_i32_125 = arith.constant 1 : i32
    %366 = arith.subi %365, %c1_i32_125 : i32
    %367 = arith.index_cast %366 : i32 to index
    %c0_126 = arith.constant 0 : index
    %c0_127 = arith.constant 0 : index
    %368 = vector.load %arg2[%367, %c0_126, %c0_127] : memref<16x16x128xf32, #tpu.memory_space<vmem>>, vector<1x16x128xf32>
    %369 = vector.shape_cast %368 : vector<1x16x128xf32> to vector<16x128xf32>
    %c0_i32_128 = arith.constant 0 : i32
    %370 = arith.addi %c0_i32_128, %c8_i32 : i32
    %371 = arith.index_cast %370 : i32 to index
    %c0_129 = arith.constant 0 : index
    %c0_130 = arith.constant 0 : index
    %372 = vector.load %arg2[%371, %c0_129, %c0_130] : memref<16x16x128xf32, #tpu.memory_space<vmem>>, vector<1x16x128xf32>
    %373 = vector.shape_cast %372 : vector<1x16x128xf32> to vector<16x128xf32>
    %c0_i32_131 = arith.constant 0 : i32
    %374 = arith.addi %c0_i32_131, %c8_i32 : i32
    %c1_i32_132 = arith.constant 1 : i32
    %375 = arith.addi %374, %c1_i32_132 : i32
    %376 = arith.index_cast %375 : i32 to index
    %c0_133 = arith.constant 0 : index
    %c0_134 = arith.constant 0 : index
    %377 = vector.load %arg2[%376, %c0_133, %c0_134] : memref<16x16x128xf32, #tpu.memory_space<vmem>>, vector<1x16x128xf32>
    %378 = vector.shape_cast %377 : vector<1x16x128xf32> to vector<16x128xf32>
    %379 = arith.mulf %369, %5 : vector<16x128xf32>
    %380 = arith.mulf %373, %20 : vector<16x128xf32>
    %381 = arith.addf %379, %380 : vector<16x128xf32>
    %382 = arith.mulf %378, %35 : vector<16x128xf32>
    %383 = arith.addf %381, %382 : vector<16x128xf32>
    %384 = arith.mulf %369, %10 : vector<16x128xf32>
    %385 = arith.mulf %373, %25 : vector<16x128xf32>
    %386 = arith.addf %384, %385 : vector<16x128xf32>
    %387 = arith.mulf %378, %40 : vector<16x128xf32>
    %388 = arith.addf %386, %387 : vector<16x128xf32>
    %389 = arith.mulf %369, %15 : vector<16x128xf32>
    %390 = arith.mulf %373, %30 : vector<16x128xf32>
    %391 = arith.addf %389, %390 : vector<16x128xf32>
    %392 = arith.mulf %378, %45 : vector<16x128xf32>
    %393 = arith.addf %391, %392 : vector<16x128xf32>
    %c1_i32_135 = arith.constant 1 : i32
    %394 = tpu.dynamic_rotate %383 by %c1_i32_135 dim 0 : vector<16x128xf32>, i32 -> vector<16x128xf32>
    %395 = arith.select %51, %394, %54 : vector<16x128xi1>, vector<16x128xf32>
    %c15_i32_136 = arith.constant 15 : i32
    %396 = tpu.dynamic_rotate %393 by %c15_i32_136 dim 0 : vector<16x128xf32>, i32 -> vector<16x128xf32>
    %397 = arith.select %53, %396, %54 : vector<16x128xi1>, vector<16x128xf32>
    %398 = arith.addf %48, %388 : vector<16x128xf32>
    %399 = arith.addf %398, %395 : vector<16x128xf32>
    %400 = arith.addf %399, %397 : vector<16x128xf32>
    %c0_i32_137 = arith.constant 0 : i32
    %401 = arith.addi %c0_i32_137, %c8_i32 : i32
    %402 = arith.index_cast %401 : i32 to index
    %c0_138 = arith.constant 0 : index
    %c0_139 = arith.constant 0 : index
    %403 = vector.load %arg5[%402, %c0_138, %c0_139] : memref<16x16x128xf32, #tpu.memory_space<vmem>>, vector<1x16x128xf32>
    %404 = vector.shape_cast %403 : vector<1x16x128xf32> to vector<16x128xf32>
    %405 = vector.shape_cast %400 : vector<16x128xf32> to vector<1x16x128xf32>
    tpu.vector_store %arg5[%402, %c0_138, %c0_139], %405 {strides = array<i32>} : memref<16x16x128xf32, #tpu.memory_space<vmem>>, vector<1x16x128xf32>,
    %c9_i32 = arith.constant 9 : i32
    %c0_i32_140 = arith.constant 0 : i32
    %406 = arith.addi %c0_i32_140, %c9_i32 : i32
    %c1_i32_141 = arith.constant 1 : i32
    %407 = arith.subi %406, %c1_i32_141 : i32
    %408 = arith.index_cast %407 : i32 to index
    %c0_142 = arith.constant 0 : index
    %c0_143 = arith.constant 0 : index
    %409 = vector.load %arg2[%408, %c0_142, %c0_143] : memref<16x16x128xf32, #tpu.memory_space<vmem>>, vector<1x16x128xf32>
    %410 = vector.shape_cast %409 : vector<1x16x128xf32> to vector<16x128xf32>
    %c0_i32_144 = arith.constant 0 : i32
    %411 = arith.addi %c0_i32_144, %c9_i32 : i32
    %412 = arith.index_cast %411 : i32 to index
    %c0_145 = arith.constant 0 : index
    %c0_146 = arith.constant 0 : index
    %413 = vector.load %arg2[%412, %c0_145, %c0_146] : memref<16x16x128xf32, #tpu.memory_space<vmem>>, vector<1x16x128xf32>
    %414 = vector.shape_cast %413 : vector<1x16x128xf32> to vector<16x128xf32>
    %c0_i32_147 = arith.constant 0 : i32
    %415 = arith.addi %c0_i32_147, %c9_i32 : i32
    %c1_i32_148 = arith.constant 1 : i32
    %416 = arith.addi %415, %c1_i32_148 : i32
    %417 = arith.index_cast %416 : i32 to index
    %c0_149 = arith.constant 0 : index
    %c0_150 = arith.constant 0 : index
    %418 = vector.load %arg2[%417, %c0_149, %c0_150] : memref<16x16x128xf32, #tpu.memory_space<vmem>>, vector<1x16x128xf32>
    %419 = vector.shape_cast %418 : vector<1x16x128xf32> to vector<16x128xf32>
    %420 = arith.mulf %410, %5 : vector<16x128xf32>
    %421 = arith.mulf %414, %20 : vector<16x128xf32>
    %422 = arith.addf %420, %421 : vector<16x128xf32>
    %423 = arith.mulf %419, %35 : vector<16x128xf32>
    %424 = arith.addf %422, %423 : vector<16x128xf32>
    %425 = arith.mulf %410, %10 : vector<16x128xf32>
    %426 = arith.mulf %414, %25 : vector<16x128xf32>
    %427 = arith.addf %425, %426 : vector<16x128xf32>
    %428 = arith.mulf %419, %40 : vector<16x128xf32>
    %429 = arith.addf %427, %428 : vector<16x128xf32>
    %430 = arith.mulf %410, %15 : vector<16x128xf32>
    %431 = arith.mulf %414, %30 : vector<16x128xf32>
    %432 = arith.addf %430, %431 : vector<16x128xf32>
    %433 = arith.mulf %419, %45 : vector<16x128xf32>
    %434 = arith.addf %432, %433 : vector<16x128xf32>
    %c1_i32_151 = arith.constant 1 : i32
    %435 = tpu.dynamic_rotate %424 by %c1_i32_151 dim 0 : vector<16x128xf32>, i32 -> vector<16x128xf32>
    %436 = arith.select %51, %435, %54 : vector<16x128xi1>, vector<16x128xf32>
    %c15_i32_152 = arith.constant 15 : i32
    %437 = tpu.dynamic_rotate %434 by %c15_i32_152 dim 0 : vector<16x128xf32>, i32 -> vector<16x128xf32>
    %438 = arith.select %53, %437, %54 : vector<16x128xi1>, vector<16x128xf32>
    %439 = arith.addf %48, %429 : vector<16x128xf32>
    %440 = arith.addf %439, %436 : vector<16x128xf32>
    %441 = arith.addf %440, %438 : vector<16x128xf32>
    %c0_i32_153 = arith.constant 0 : i32
    %442 = arith.addi %c0_i32_153, %c9_i32 : i32
    %443 = arith.index_cast %442 : i32 to index
    %c0_154 = arith.constant 0 : index
    %c0_155 = arith.constant 0 : index
    %444 = vector.load %arg5[%443, %c0_154, %c0_155] : memref<16x16x128xf32, #tpu.memory_space<vmem>>, vector<1x16x128xf32>
    %445 = vector.shape_cast %444 : vector<1x16x128xf32> to vector<16x128xf32>
    %446 = vector.shape_cast %441 : vector<16x128xf32> to vector<1x16x128xf32>
    tpu.vector_store %arg5[%443, %c0_154, %c0_155], %446 {strides = array<i32>} : memref<16x16x128xf32, #tpu.memory_space<vmem>>, vector<1x16x128xf32>,
    %c10_i32 = arith.constant 10 : i32
    %c0_i32_156 = arith.constant 0 : i32
    %447 = arith.addi %c0_i32_156, %c10_i32 : i32
    %c1_i32_157 = arith.constant 1 : i32
    %448 = arith.subi %447, %c1_i32_157 : i32
    %449 = arith.index_cast %448 : i32 to index
    %c0_158 = arith.constant 0 : index
    %c0_159 = arith.constant 0 : index
    %450 = vector.load %arg2[%449, %c0_158, %c0_159] : memref<16x16x128xf32, #tpu.memory_space<vmem>>, vector<1x16x128xf32>
    %451 = vector.shape_cast %450 : vector<1x16x128xf32> to vector<16x128xf32>
    %c0_i32_160 = arith.constant 0 : i32
    %452 = arith.addi %c0_i32_160, %c10_i32 : i32
    %453 = arith.index_cast %452 : i32 to index
    %c0_161 = arith.constant 0 : index
    %c0_162 = arith.constant 0 : index
    %454 = vector.load %arg2[%453, %c0_161, %c0_162] : memref<16x16x128xf32, #tpu.memory_space<vmem>>, vector<1x16x128xf32>
    %455 = vector.shape_cast %454 : vector<1x16x128xf32> to vector<16x128xf32>
    %c0_i32_163 = arith.constant 0 : i32
    %456 = arith.addi %c0_i32_163, %c10_i32 : i32
    %c1_i32_164 = arith.constant 1 : i32
    %457 = arith.addi %456, %c1_i32_164 : i32
    %458 = arith.index_cast %457 : i32 to index
    %c0_165 = arith.constant 0 : index
    %c0_166 = arith.constant 0 : index
    %459 = vector.load %arg2[%458, %c0_165, %c0_166] : memref<16x16x128xf32, #tpu.memory_space<vmem>>, vector<1x16x128xf32>
    %460 = vector.shape_cast %459 : vector<1x16x128xf32> to vector<16x128xf32>
    %461 = arith.mulf %451, %5 : vector<16x128xf32>
    %462 = arith.mulf %455, %20 : vector<16x128xf32>
    %463 = arith.addf %461, %462 : vector<16x128xf32>
    %464 = arith.mulf %460, %35 : vector<16x128xf32>
    %465 = arith.addf %463, %464 : vector<16x128xf32>
    %466 = arith.mulf %451, %10 : vector<16x128xf32>
    %467 = arith.mulf %455, %25 : vector<16x128xf32>
    %468 = arith.addf %466, %467 : vector<16x128xf32>
    %469 = arith.mulf %460, %40 : vector<16x128xf32>
    %470 = arith.addf %468, %469 : vector<16x128xf32>
    %471 = arith.mulf %451, %15 : vector<16x128xf32>
    %472 = arith.mulf %455, %30 : vector<16x128xf32>
    %473 = arith.addf %471, %472 : vector<16x128xf32>
    %474 = arith.mulf %460, %45 : vector<16x128xf32>
    %475 = arith.addf %473, %474 : vector<16x128xf32>
    %c1_i32_167 = arith.constant 1 : i32
    %476 = tpu.dynamic_rotate %465 by %c1_i32_167 dim 0 : vector<16x128xf32>, i32 -> vector<16x128xf32>
    %477 = arith.select %51, %476, %54 : vector<16x128xi1>, vector<16x128xf32>
    %c15_i32_168 = arith.constant 15 : i32
    %478 = tpu.dynamic_rotate %475 by %c15_i32_168 dim 0 : vector<16x128xf32>, i32 -> vector<16x128xf32>
    %479 = arith.select %53, %478, %54 : vector<16x128xi1>, vector<16x128xf32>
    %480 = arith.addf %48, %470 : vector<16x128xf32>
    %481 = arith.addf %480, %477 : vector<16x128xf32>
    %482 = arith.addf %481, %479 : vector<16x128xf32>
    %c0_i32_169 = arith.constant 0 : i32
    %483 = arith.addi %c0_i32_169, %c10_i32 : i32
    %484 = arith.index_cast %483 : i32 to index
    %c0_170 = arith.constant 0 : index
    %c0_171 = arith.constant 0 : index
    %485 = vector.load %arg5[%484, %c0_170, %c0_171] : memref<16x16x128xf32, #tpu.memory_space<vmem>>, vector<1x16x128xf32>
    %486 = vector.shape_cast %485 : vector<1x16x128xf32> to vector<16x128xf32>
    %487 = vector.shape_cast %482 : vector<16x128xf32> to vector<1x16x128xf32>
    tpu.vector_store %arg5[%484, %c0_170, %c0_171], %487 {strides = array<i32>} : memref<16x16x128xf32, #tpu.memory_space<vmem>>, vector<1x16x128xf32>,
    %c11_i32 = arith.constant 11 : i32
    %c0_i32_172 = arith.constant 0 : i32
    %488 = arith.addi %c0_i32_172, %c11_i32 : i32
    %c1_i32_173 = arith.constant 1 : i32
    %489 = arith.subi %488, %c1_i32_173 : i32
    %490 = arith.index_cast %489 : i32 to index
    %c0_174 = arith.constant 0 : index
    %c0_175 = arith.constant 0 : index
    %491 = vector.load %arg2[%490, %c0_174, %c0_175] : memref<16x16x128xf32, #tpu.memory_space<vmem>>, vector<1x16x128xf32>
    %492 = vector.shape_cast %491 : vector<1x16x128xf32> to vector<16x128xf32>
    %c0_i32_176 = arith.constant 0 : i32
    %493 = arith.addi %c0_i32_176, %c11_i32 : i32
    %494 = arith.index_cast %493 : i32 to index
    %c0_177 = arith.constant 0 : index
    %c0_178 = arith.constant 0 : index
    %495 = vector.load %arg2[%494, %c0_177, %c0_178] : memref<16x16x128xf32, #tpu.memory_space<vmem>>, vector<1x16x128xf32>
    %496 = vector.shape_cast %495 : vector<1x16x128xf32> to vector<16x128xf32>
    %c0_i32_179 = arith.constant 0 : i32
    %497 = arith.addi %c0_i32_179, %c11_i32 : i32
    %c1_i32_180 = arith.constant 1 : i32
    %498 = arith.addi %497, %c1_i32_180 : i32
    %499 = arith.index_cast %498 : i32 to index
    %c0_181 = arith.constant 0 : index
    %c0_182 = arith.constant 0 : index
    %500 = vector.load %arg2[%499, %c0_181, %c0_182] : memref<16x16x128xf32, #tpu.memory_space<vmem>>, vector<1x16x128xf32>
    %501 = vector.shape_cast %500 : vector<1x16x128xf32> to vector<16x128xf32>
    %502 = arith.mulf %492, %5 : vector<16x128xf32>
    %503 = arith.mulf %496, %20 : vector<16x128xf32>
    %504 = arith.addf %502, %503 : vector<16x128xf32>
    %505 = arith.mulf %501, %35 : vector<16x128xf32>
    %506 = arith.addf %504, %505 : vector<16x128xf32>
    %507 = arith.mulf %492, %10 : vector<16x128xf32>
    %508 = arith.mulf %496, %25 : vector<16x128xf32>
    %509 = arith.addf %507, %508 : vector<16x128xf32>
    %510 = arith.mulf %501, %40 : vector<16x128xf32>
    %511 = arith.addf %509, %510 : vector<16x128xf32>
    %512 = arith.mulf %492, %15 : vector<16x128xf32>
    %513 = arith.mulf %496, %30 : vector<16x128xf32>
    %514 = arith.addf %512, %513 : vector<16x128xf32>
    %515 = arith.mulf %501, %45 : vector<16x128xf32>
    %516 = arith.addf %514, %515 : vector<16x128xf32>
    %c1_i32_183 = arith.constant 1 : i32
    %517 = tpu.dynamic_rotate %506 by %c1_i32_183 dim 0 : vector<16x128xf32>, i32 -> vector<16x128xf32>
    %518 = arith.select %51, %517, %54 : vector<16x128xi1>, vector<16x128xf32>
    %c15_i32_184 = arith.constant 15 : i32
    %519 = tpu.dynamic_rotate %516 by %c15_i32_184 dim 0 : vector<16x128xf32>, i32 -> vector<16x128xf32>
    %520 = arith.select %53, %519, %54 : vector<16x128xi1>, vector<16x128xf32>
    %521 = arith.addf %48, %511 : vector<16x128xf32>
    %522 = arith.addf %521, %518 : vector<16x128xf32>
    %523 = arith.addf %522, %520 : vector<16x128xf32>
    %c0_i32_185 = arith.constant 0 : i32
    %524 = arith.addi %c0_i32_185, %c11_i32 : i32
    %525 = arith.index_cast %524 : i32 to index
    %c0_186 = arith.constant 0 : index
    %c0_187 = arith.constant 0 : index
    %526 = vector.load %arg5[%525, %c0_186, %c0_187] : memref<16x16x128xf32, #tpu.memory_space<vmem>>, vector<1x16x128xf32>
    %527 = vector.shape_cast %526 : vector<1x16x128xf32> to vector<16x128xf32>
    %528 = vector.shape_cast %523 : vector<16x128xf32> to vector<1x16x128xf32>
    tpu.vector_store %arg5[%525, %c0_186, %c0_187], %528 {strides = array<i32>} : memref<16x16x128xf32, #tpu.memory_space<vmem>>, vector<1x16x128xf32>,
    %c12_i32 = arith.constant 12 : i32
    %c0_i32_188 = arith.constant 0 : i32
    %529 = arith.addi %c0_i32_188, %c12_i32 : i32
    %c1_i32_189 = arith.constant 1 : i32
    %530 = arith.subi %529, %c1_i32_189 : i32
    %531 = arith.index_cast %530 : i32 to index
    %c0_190 = arith.constant 0 : index
    %c0_191 = arith.constant 0 : index
    %532 = vector.load %arg2[%531, %c0_190, %c0_191] : memref<16x16x128xf32, #tpu.memory_space<vmem>>, vector<1x16x128xf32>
    %533 = vector.shape_cast %532 : vector<1x16x128xf32> to vector<16x128xf32>
    %c0_i32_192 = arith.constant 0 : i32
    %534 = arith.addi %c0_i32_192, %c12_i32 : i32
    %535 = arith.index_cast %534 : i32 to index
    %c0_193 = arith.constant 0 : index
    %c0_194 = arith.constant 0 : index
    %536 = vector.load %arg2[%535, %c0_193, %c0_194] : memref<16x16x128xf32, #tpu.memory_space<vmem>>, vector<1x16x128xf32>
    %537 = vector.shape_cast %536 : vector<1x16x128xf32> to vector<16x128xf32>
    %c0_i32_195 = arith.constant 0 : i32
    %538 = arith.addi %c0_i32_195, %c12_i32 : i32
    %c1_i32_196 = arith.constant 1 : i32
    %539 = arith.addi %538, %c1_i32_196 : i32
    %540 = arith.index_cast %539 : i32 to index
    %c0_197 = arith.constant 0 : index
    %c0_198 = arith.constant 0 : index
    %541 = vector.load %arg2[%540, %c0_197, %c0_198] : memref<16x16x128xf32, #tpu.memory_space<vmem>>, vector<1x16x128xf32>
    %542 = vector.shape_cast %541 : vector<1x16x128xf32> to vector<16x128xf32>
    %543 = arith.mulf %533, %5 : vector<16x128xf32>
    %544 = arith.mulf %537, %20 : vector<16x128xf32>
    %545 = arith.addf %543, %544 : vector<16x128xf32>
    %546 = arith.mulf %542, %35 : vector<16x128xf32>
    %547 = arith.addf %545, %546 : vector<16x128xf32>
    %548 = arith.mulf %533, %10 : vector<16x128xf32>
    %549 = arith.mulf %537, %25 : vector<16x128xf32>
    %550 = arith.addf %548, %549 : vector<16x128xf32>
    %551 = arith.mulf %542, %40 : vector<16x128xf32>
    %552 = arith.addf %550, %551 : vector<16x128xf32>
    %553 = arith.mulf %533, %15 : vector<16x128xf32>
    %554 = arith.mulf %537, %30 : vector<16x128xf32>
    %555 = arith.addf %553, %554 : vector<16x128xf32>
    %556 = arith.mulf %542, %45 : vector<16x128xf32>
    %557 = arith.addf %555, %556 : vector<16x128xf32>
    %c1_i32_199 = arith.constant 1 : i32
    %558 = tpu.dynamic_rotate %547 by %c1_i32_199 dim 0 : vector<16x128xf32>, i32 -> vector<16x128xf32>
    %559 = arith.select %51, %558, %54 : vector<16x128xi1>, vector<16x128xf32>
    %c15_i32_200 = arith.constant 15 : i32
    %560 = tpu.dynamic_rotate %557 by %c15_i32_200 dim 0 : vector<16x128xf32>, i32 -> vector<16x128xf32>
    %561 = arith.select %53, %560, %54 : vector<16x128xi1>, vector<16x128xf32>
    %562 = arith.addf %48, %552 : vector<16x128xf32>
    %563 = arith.addf %562, %559 : vector<16x128xf32>
    %564 = arith.addf %563, %561 : vector<16x128xf32>
    %c0_i32_201 = arith.constant 0 : i32
    %565 = arith.addi %c0_i32_201, %c12_i32 : i32
    %566 = arith.index_cast %565 : i32 to index
    %c0_202 = arith.constant 0 : index
    %c0_203 = arith.constant 0 : index
    %567 = vector.load %arg5[%566, %c0_202, %c0_203] : memref<16x16x128xf32, #tpu.memory_space<vmem>>, vector<1x16x128xf32>
    %568 = vector.shape_cast %567 : vector<1x16x128xf32> to vector<16x128xf32>
    %569 = vector.shape_cast %564 : vector<16x128xf32> to vector<1x16x128xf32>
    tpu.vector_store %arg5[%566, %c0_202, %c0_203], %569 {strides = array<i32>} : memref<16x16x128xf32, #tpu.memory_space<vmem>>, vector<1x16x128xf32>,
    %c13_i32 = arith.constant 13 : i32
    %c0_i32_204 = arith.constant 0 : i32
    %570 = arith.addi %c0_i32_204, %c13_i32 : i32
    %c1_i32_205 = arith.constant 1 : i32
    %571 = arith.subi %570, %c1_i32_205 : i32
    %572 = arith.index_cast %571 : i32 to index
    %c0_206 = arith.constant 0 : index
    %c0_207 = arith.constant 0 : index
    %573 = vector.load %arg2[%572, %c0_206, %c0_207] : memref<16x16x128xf32, #tpu.memory_space<vmem>>, vector<1x16x128xf32>
    %574 = vector.shape_cast %573 : vector<1x16x128xf32> to vector<16x128xf32>
    %c0_i32_208 = arith.constant 0 : i32
    %575 = arith.addi %c0_i32_208, %c13_i32 : i32
    %576 = arith.index_cast %575 : i32 to index
    %c0_209 = arith.constant 0 : index
    %c0_210 = arith.constant 0 : index
    %577 = vector.load %arg2[%576, %c0_209, %c0_210] : memref<16x16x128xf32, #tpu.memory_space<vmem>>, vector<1x16x128xf32>
    %578 = vector.shape_cast %577 : vector<1x16x128xf32> to vector<16x128xf32>
    %c0_i32_211 = arith.constant 0 : i32
    %579 = arith.addi %c0_i32_211, %c13_i32 : i32
    %c1_i32_212 = arith.constant 1 : i32
    %580 = arith.addi %579, %c1_i32_212 : i32
    %581 = arith.index_cast %580 : i32 to index
    %c0_213 = arith.constant 0 : index
    %c0_214 = arith.constant 0 : index
    %582 = vector.load %arg2[%581, %c0_213, %c0_214] : memref<16x16x128xf32, #tpu.memory_space<vmem>>, vector<1x16x128xf32>
    %583 = vector.shape_cast %582 : vector<1x16x128xf32> to vector<16x128xf32>
    %584 = arith.mulf %574, %5 : vector<16x128xf32>
    %585 = arith.mulf %578, %20 : vector<16x128xf32>
    %586 = arith.addf %584, %585 : vector<16x128xf32>
    %587 = arith.mulf %583, %35 : vector<16x128xf32>
    %588 = arith.addf %586, %587 : vector<16x128xf32>
    %589 = arith.mulf %574, %10 : vector<16x128xf32>
    %590 = arith.mulf %578, %25 : vector<16x128xf32>
    %591 = arith.addf %589, %590 : vector<16x128xf32>
    %592 = arith.mulf %583, %40 : vector<16x128xf32>
    %593 = arith.addf %591, %592 : vector<16x128xf32>
    %594 = arith.mulf %574, %15 : vector<16x128xf32>
    %595 = arith.mulf %578, %30 : vector<16x128xf32>
    %596 = arith.addf %594, %595 : vector<16x128xf32>
    %597 = arith.mulf %583, %45 : vector<16x128xf32>
    %598 = arith.addf %596, %597 : vector<16x128xf32>
    %c1_i32_215 = arith.constant 1 : i32
    %599 = tpu.dynamic_rotate %588 by %c1_i32_215 dim 0 : vector<16x128xf32>, i32 -> vector<16x128xf32>
    %600 = arith.select %51, %599, %54 : vector<16x128xi1>, vector<16x128xf32>
    %c15_i32_216 = arith.constant 15 : i32
    %601 = tpu.dynamic_rotate %598 by %c15_i32_216 dim 0 : vector<16x128xf32>, i32 -> vector<16x128xf32>
    %602 = arith.select %53, %601, %54 : vector<16x128xi1>, vector<16x128xf32>
    %603 = arith.addf %48, %593 : vector<16x128xf32>
    %604 = arith.addf %603, %600 : vector<16x128xf32>
    %605 = arith.addf %604, %602 : vector<16x128xf32>
    %c0_i32_217 = arith.constant 0 : i32
    %606 = arith.addi %c0_i32_217, %c13_i32 : i32
    %607 = arith.index_cast %606 : i32 to index
    %c0_218 = arith.constant 0 : index
    %c0_219 = arith.constant 0 : index
    %608 = vector.load %arg5[%607, %c0_218, %c0_219] : memref<16x16x128xf32, #tpu.memory_space<vmem>>, vector<1x16x128xf32>
    %609 = vector.shape_cast %608 : vector<1x16x128xf32> to vector<16x128xf32>
    %610 = vector.shape_cast %605 : vector<16x128xf32> to vector<1x16x128xf32>
    tpu.vector_store %arg5[%607, %c0_218, %c0_219], %610 {strides = array<i32>} : memref<16x16x128xf32, #tpu.memory_space<vmem>>, vector<1x16x128xf32>,
    %c14_i32_220 = arith.constant 14 : i32
    %c0_i32_221 = arith.constant 0 : i32
    %611 = arith.addi %c0_i32_221, %c14_i32_220 : i32
    %c1_i32_222 = arith.constant 1 : i32
    %612 = arith.subi %611, %c1_i32_222 : i32
    %613 = arith.index_cast %612 : i32 to index
    %c0_223 = arith.constant 0 : index
    %c0_224 = arith.constant 0 : index
    %614 = vector.load %arg2[%613, %c0_223, %c0_224] : memref<16x16x128xf32, #tpu.memory_space<vmem>>, vector<1x16x128xf32>
    %615 = vector.shape_cast %614 : vector<1x16x128xf32> to vector<16x128xf32>
    %c0_i32_225 = arith.constant 0 : i32
    %616 = arith.addi %c0_i32_225, %c14_i32_220 : i32
    %617 = arith.index_cast %616 : i32 to index
    %c0_226 = arith.constant 0 : index
    %c0_227 = arith.constant 0 : index
    %618 = vector.load %arg2[%617, %c0_226, %c0_227] : memref<16x16x128xf32, #tpu.memory_space<vmem>>, vector<1x16x128xf32>
    %619 = vector.shape_cast %618 : vector<1x16x128xf32> to vector<16x128xf32>
    %c0_i32_228 = arith.constant 0 : i32
    %620 = arith.addi %c0_i32_228, %c14_i32_220 : i32
    %c1_i32_229 = arith.constant 1 : i32
    %621 = arith.addi %620, %c1_i32_229 : i32
    %622 = arith.index_cast %621 : i32 to index
    %c0_230 = arith.constant 0 : index
    %c0_231 = arith.constant 0 : index
    %623 = vector.load %arg2[%622, %c0_230, %c0_231] : memref<16x16x128xf32, #tpu.memory_space<vmem>>, vector<1x16x128xf32>
    %624 = vector.shape_cast %623 : vector<1x16x128xf32> to vector<16x128xf32>
    %625 = arith.mulf %615, %5 : vector<16x128xf32>
    %626 = arith.mulf %619, %20 : vector<16x128xf32>
    %627 = arith.addf %625, %626 : vector<16x128xf32>
    %628 = arith.mulf %624, %35 : vector<16x128xf32>
    %629 = arith.addf %627, %628 : vector<16x128xf32>
    %630 = arith.mulf %615, %10 : vector<16x128xf32>
    %631 = arith.mulf %619, %25 : vector<16x128xf32>
    %632 = arith.addf %630, %631 : vector<16x128xf32>
    %633 = arith.mulf %624, %40 : vector<16x128xf32>
    %634 = arith.addf %632, %633 : vector<16x128xf32>
    %635 = arith.mulf %615, %15 : vector<16x128xf32>
    %636 = arith.mulf %619, %30 : vector<16x128xf32>
    %637 = arith.addf %635, %636 : vector<16x128xf32>
    %638 = arith.mulf %624, %45 : vector<16x128xf32>
    %639 = arith.addf %637, %638 : vector<16x128xf32>
    %c1_i32_232 = arith.constant 1 : i32
    %640 = tpu.dynamic_rotate %629 by %c1_i32_232 dim 0 : vector<16x128xf32>, i32 -> vector<16x128xf32>
    %641 = arith.select %51, %640, %54 : vector<16x128xi1>, vector<16x128xf32>
    %c15_i32_233 = arith.constant 15 : i32
    %642 = tpu.dynamic_rotate %639 by %c15_i32_233 dim 0 : vector<16x128xf32>, i32 -> vector<16x128xf32>
    %643 = arith.select %53, %642, %54 : vector<16x128xi1>, vector<16x128xf32>
    %644 = arith.addf %48, %634 : vector<16x128xf32>
    %645 = arith.addf %644, %641 : vector<16x128xf32>
    %646 = arith.addf %645, %643 : vector<16x128xf32>
    %c0_i32_234 = arith.constant 0 : i32
    %647 = arith.addi %c0_i32_234, %c14_i32_220 : i32
    %648 = arith.index_cast %647 : i32 to index
    %c0_235 = arith.constant 0 : index
    %c0_236 = arith.constant 0 : index
    %649 = vector.load %arg5[%648, %c0_235, %c0_236] : memref<16x16x128xf32, #tpu.memory_space<vmem>>, vector<1x16x128xf32>
    %650 = vector.shape_cast %649 : vector<1x16x128xf32> to vector<16x128xf32>
    %651 = vector.shape_cast %646 : vector<16x128xf32> to vector<1x16x128xf32>
    tpu.vector_store %arg5[%648, %c0_235, %c0_236], %651 {strides = array<i32>} : memref<16x16x128xf32, #tpu.memory_space<vmem>>, vector<1x16x128xf32>,
    %c14_i32_237 = arith.constant 14 : i32
    %c14 = arith.constant 14 : index
    %c0_238 = arith.constant 0 : index
    %c0_239 = arith.constant 0 : index
    %652 = vector.load %arg2[%c14, %c0_238, %c0_239] : memref<16x16x128xf32, #tpu.memory_space<vmem>>, vector<1x16x128xf32>
    %653 = vector.shape_cast %652 : vector<1x16x128xf32> to vector<16x128xf32>
    %c15 = arith.constant 15 : index
    %c0_240 = arith.constant 0 : index
    %c0_241 = arith.constant 0 : index
    %654 = vector.load %arg2[%c15, %c0_240, %c0_241] : memref<16x16x128xf32, #tpu.memory_space<vmem>>, vector<1x16x128xf32>
    %655 = vector.shape_cast %654 : vector<1x16x128xf32> to vector<16x128xf32>
    %656 = arith.mulf %653, %5 : vector<16x128xf32>
    %657 = arith.mulf %655, %20 : vector<16x128xf32>
    %658 = arith.addf %656, %657 : vector<16x128xf32>
    %659 = arith.mulf %653, %10 : vector<16x128xf32>
    %660 = arith.mulf %655, %25 : vector<16x128xf32>
    %661 = arith.addf %659, %660 : vector<16x128xf32>
    %662 = arith.mulf %653, %15 : vector<16x128xf32>
    %663 = arith.mulf %655, %30 : vector<16x128xf32>
    %664 = arith.addf %662, %663 : vector<16x128xf32>
    %c1_i32_242 = arith.constant 1 : i32
    %665 = tpu.dynamic_rotate %658 by %c1_i32_242 dim 0 : vector<16x128xf32>, i32 -> vector<16x128xf32>
    %666 = arith.select %51, %665, %54 : vector<16x128xi1>, vector<16x128xf32>
    %c15_i32_243 = arith.constant 15 : i32
    %667 = tpu.dynamic_rotate %664 by %c15_i32_243 dim 0 : vector<16x128xf32>, i32 -> vector<16x128xf32>
    %668 = arith.select %53, %667, %54 : vector<16x128xi1>, vector<16x128xf32>
    %669 = arith.addf %48, %661 : vector<16x128xf32>
    %670 = arith.addf %669, %666 : vector<16x128xf32>
    %671 = arith.addf %670, %668 : vector<16x128xf32>
    %c15_244 = arith.constant 15 : index
    %c0_245 = arith.constant 0 : index
    %c0_246 = arith.constant 0 : index
    %672 = vector.load %arg5[%c15_244, %c0_245, %c0_246] : memref<16x16x128xf32, #tpu.memory_space<vmem>>, vector<1x16x128xf32>
    %673 = vector.shape_cast %672 : vector<1x16x128xf32> to vector<16x128xf32>
    %674 = vector.shape_cast %671 : vector<16x128xf32> to vector<1x16x128xf32>
    tpu.vector_store %arg5[%c15_244, %c0_245, %c0_246], %674 {strides = array<i32>} : memref<16x16x128xf32, #tpu.memory_space<vmem>>, vector<1x16x128xf32>,
    return
  }
  func.func @transform_0(%arg0: i32, %arg1: i32) -> (i32, i32, i32) {
    %c0_i32 = arith.constant 0 : i32
    %c0_i32_0 = arith.constant 0 : i32
    return %arg0, %c0_i32, %arg1 : i32, i32, i32
  }
  func.func @transform_1(%arg0: i32, %arg1: i32) -> (i32, i32) {
    %c0_i32 = arith.constant 0 : i32
    %c0_i32_0 = arith.constant 0 : i32
    return %c0_i32, %arg1 : i32, i32
  }
  func.func @transform_2(%arg0: i32, %arg1: i32) -> (i32, i32) {
    %c0_i32 = arith.constant 0 : i32
    %c0_i32_0 = arith.constant 0 : i32
    return %c0_i32, %arg1 : i32, i32
  }
  func.func @transform_3(%arg0: i32, %arg1: i32) -> (i32, i32, i32) {
    %c0_i32 = arith.constant 0 : i32
    %c0_i32_0 = arith.constant 0 : i32
    return %arg0, %c0_i32, %arg1 : i32, i32, i32
  }
}

</mosaic_0001>

<bundles_post_ra>
// kernel: tpu_custom_call.1
= control target key start
LH: loop header
LB: loop body
LE: loop exit
PB: predicated region body
PF: predicated region fallthrough
CT: control target
= control target key end

     0   :  { %s2793_s0 = inlined_call_operand.hbm [shape: f32[32,16,128], index: 0, kind: input, shape index: {}]   ;;  %s2794_s1 = inlined_call_operand.hbm [shape: f32[9,128], index: 1, kind: input, shape index: {}]   ;;  %s2795_s2 = inlined_call_operand.vmem [shape: f32[1,128], index: 2, kind: input, shape index: {}]   ;;  %s2796_s3 = inlined_call_operand.hbm [shape: f32[32,16,128], index: 3, kind: output, shape index: {}]  }
   0x1   :  { %2798 = sst [smem:[#allocation11_spill]] %s2794_s1 }
   0x2   :  { %8 = vsyncpa [#allocation3], 0 }
   0x3   :  { %10 = vsyncpa [#allocation3 + $0x1], 0 }
   0x4   :  { %11 = vsyncpa [#allocation6], 0 }
   0x5   :  { %12 = vsyncpa [#allocation4], 0 }
   0x6   :  { %14 = vsyncpa [#allocation4 + $0x1], 0  ;;  %s1694_s12 = smov 0   ;;  %s1696_s13 = smov 0  }
   0x7   :  { %s1698_s14 = smov 0   ;;  %s1700_s15 = smov 0  }
   0x8   :  { %s1702_s16 = smov 0   ;;  %s1704_s17 = smov 0  }
   0x9 LB: > { %s1298_s18 = sadd.s32 4294967295, %s1667_s17   ;;  %s1299_s19 = sadd.s32 4294967294, %s1667_s17   ;;  %s1667_s17 = sphi %s1704_s17, %s20_s17   ;;  %s1663_s16 = sphi %s1702_s16, %s2812_s16   ;;  %s1659_s15 = sphi %s1700_s15, %s2811_s15   ;;  %s1655_s14 = sphi %s1698_s14, %s2810_s14   ;;  %s1651_s13 = sphi %s1696_s13, %s2809_s13   ;;  %s1647_s12 = sphi %s1694_s12, %s2808_s12  }
   0xa   : > { %p54_p0 = scmp.ne.s32.totalorder %s1651_s13, %s1647_s12  ;;  %p1728_p1 = scmp.eq.s32.totalorder %s1298_s18, 0 }
   0xb   : > { %p1732_p2 = scmp.eq.s32.totalorder %s1298_s18, 1  ;;  %p138_p3 = scmp.eq.s32.totalorder %s1299_s19, 1 }
   0xc   : > { %p1738_p4 = por %p1728_p1, %p54_p0  ;;  %p1300_p5 = scmp.ge.s32.totalorder %s1667_s17, 1 }
   0xd   : > { %p1743_p6 = por %p138_p3, %p54_p0  ;;  %p145_p7 = scmp.lt.s32.totalorder %s1667_s17, 3 }
   0xe   : > { %s2803_s1 = sld [smem:[#allocation11_spill]]  ;;  %s1669_s28 = smov [#allocation5]  }
   0xf   : > { %p1751_p8 = pnand %p1300_p5, %p145_p7  ;;  %s160_s29 = sshll.u32 %s1669_s28, 4  ;;  %s161_s29 = int_to_ptr.vmem [resolvable:$true] %s160_s29 }
  0x10   : > { %p1303_p11 = scmp.ge.s32.totalorder %s1667_s17, 2  ;;  %s2797_s30 = smov 128  }
  0x11   : > { %p1448_p9 = pneg %p1751_p8  ;;  %s1671_s4 = smov 8  }
  0x12   : > { %s32_s5 = sadd.s32 1, %s1663_s16  ;;  %s41_s6 = sadd.s32 1, %s1655_s14 }
  0x13   : > { %p1449_p10 = pnand %p1448_p9, %p1728_p1  ;;  %p34_p12 = scmp.ge.s32.totalorder %s32_s5, 2 }
  0x14   : > { %s158_s26 = sshll.u32 %s2803_s1, 4  ;;  %p48_p13 = scmp.ne.s32.totalorder %s1655_s14, %s1651_s13  ;;  %s159_s26 = int_to_ptr.hbm [resolvable:$true] %s158_s26 }
  0x15   : > { %1451 = dma.hbm_to_vmem [thread:$0]  (!%p1449_p10), %s159_s26, 256, %s161_s29, [#allocation6], %s2797_s30, %s2797_s30, %s1671_s4  }
  0x16   : > { %p49_p0 = scmp.eq.s32.totalorder %s1667_s17, 0  ;;  %s2814_s5 = smov (%p34_p12, %s32_s5), 0 }
  0x17   : > { %p1776_p5 = por %p1732_p2, %p48_p13  ;;  %s36_s9 = ssub.s32 %s1663_s16, %s2814_s5 }
  0x18   : > { %p1770_p3 = por %p49_p0, %p48_p13  ;;  %p1461_p7 = scmp.lt.s32.totalorder %s1667_s17, 2 }
  0x19   : > { %p39_p9 = scmp.eq.s32.totalorder %s36_s9, 0  ;;  %s180_s10 = sand.u32 1, %s1655_s14  }
  0x1a   : > { %s1304_s11 = sshll.u32 %s180_s10, 8  ;;  %s1437_s19 = sshll.u32 %s1663_s16, 8 }
  0x1b   : > { %s1785_s18 = scalar_select %p39_p9, %s1655_s14, %s41_s6  }
  0x1c   : > { %s191_s26 = scalar_lea.hbm %s2793_s0, %s1437_s19  ;;  %s184_s28 = scalar_lea.vmem [#allocation2], %s1304_s11 }
  0x1d   : > { %s194_s29 = sshll.u32 %s184_s28, 4  ;;  %s192_s21 = sshll.u32 %s191_s26, 4  ;;  %s195_s29 = int_to_ptr.vmem [resolvable:$true] %s194_s29  ;;  %s193_s21 = int_to_ptr.hbm [resolvable:$true] %s192_s21 }
  0x1e   : > { %p1453_p2 = pnand %p1461_p7, %p1770_p3  ;;  %s181_s30 = scalar_lea.sflag [#allocation3], %s180_s10 }
  0x1f   : > { %s2807_s1 = smov 128   ;;  %206 = sbr.rel (%p1751_p8) target bundleno = 231 (0xe7), region = 32 }
  0x20   : > { %1455 = dma.hbm_to_vmem [thread:$0]  (!%p1453_p2), %s193_s21, 4096, %s195_s29, %s181_s30, %s2807_s1, %s2807_s1, %s1671_s4  }
  0x21   : > { %s1799_s6 = sand.u32 (!%p1751_p8), 1, %s1651_s13  }
  0x22   : > { %s1309_s9 = sshll.u32 (!%p1751_p8), %s1799_s6, 8  ;;  %s209_s11 = scalar_lea.sflag (!%p1751_p8), [#allocation3], %s1799_s6 }
  0x23   : > { %s1805_s7 = scalar_lea.vmem (!%p1751_p8), [#allocation2], %s1309_s9 }
  0x24   : > { %1634 = dma.done.wait (%p1738_p4), %s209_s11, 4096  }
  0x25   : > { %1636 = vsyncadd (%p1738_p4), %s209_s11, 4294963200 }
  0x26   : > { %1638 = dma.done.wait (%p1728_p1), [#allocation6], 256  }
  0x27   : > { %1640 = vsyncadd (%p1728_p1), [#allocation6], 4294967040  ;;  %v264_v0 = vlaneseq  ;;  %v249_v3 = vld [vmem:[#allocation5] sm:$0xff]  ;;  %v1820_v4 = vld [vmem:[#allocation5 + $0x8] ss:$0 sm:$0xff]  ;;  %s1917_s22 = scalar_lea.vmem [#allocation7], %s1309_s9 }
  0x28   : > { %v1824_v5 = vperm.slane %v249_v3, 3  ;;  %v1826_v6 = vperm.slane %v249_v3, 4  ;;  %v1828_v7 = vperm.slane %v249_v3, 5  ;;  %v1830_v8 = vperm.slane %v249_v3, 6  ;;  %v271_v10 = vld [vmem:[%s1805_s7] sm:$0xff]  ;;  %v1836_v11 = vld [vmem:[%s1805_s7 + $0x8] sm:$0xff] }
  0x29   : > { %v1815_v1 = vshrl.u32 %v264_v0, 7  ;;  %v1832_v9 = vperm.slane %v249_v3, 7  ;;  %v1840_v12 = vperm.slane %v249_v3, 0  ;;  %v1843_v13 = vld [vmem:[%s1805_s7 + $0x10] sm:$0xff]  ;;  %v1846_v14 = vld [vmem:[%s1805_s7 + $0x18] sm:$0xff]  ;;  %v1874_v31 = vperm.slane %v249_v3, 1 }
  0x2a   : > { %v276_v15 = vmul.f32 %v271_v10, %v1824_v5  ;;  %v277_v16 = vmul.f32 %v1836_v11, %v1824_v5  ;;  %v282_v17 = vmul.f32 %v271_v10, %v1826_v6  ;;  %v288_v18 = vmul.f32 %v271_v10, %v1828_v7  ;;  %v1856_v19 = vld [vmem:[%s2795_s2] ss:$0 sm:$0xff]  ;;  %v1903_v55 = vld [vmem:[%s1805_s7 + $0x28] sm:$0xff]  ;;  %s1439_s4 = sshll.u32 %s1659_s15, 8  ;;  %s1186_s24 = sshll.u32 %s1917_s22, 4  ;;  %s1187_s24 = int_to_ptr.vmem [resolvable:$true] %s1186_s24 }
  0x2b   : > { %v1818_v2 = vadd.s32 8, %v1815_v1  ;;  %vm267_vm0 = vcmp.ge.s32.totalorder %v1815_v1, 1  ;;  %vm296_vm1 = vcmp.lt.s32.totalorder %v1815_v1, 1  ;;  %vm303_vm2 = vcmp.lt.s32.totalorder %v1815_v1, 7  ;;  %v1900_v54 = vld [vmem:[%s1805_s7 + $0x20] sm:$0xff]  ;;  %s1185_s19 = scalar_lea.hbm %s2796_s3, %s1439_s4  ;;  %s1172_s26 = scalar_lea.sflag [#allocation4], %s1799_s6 }
  0x2c   : > { %v278_v20 = vmul.f32 %v1843_v13, %v1830_v8  ;;  %v279_v21 = vmul.f32 %v1846_v14, %v1830_v8  ;;  %v284_v22 = vmul.f32 %v1843_v13, %v1832_v9  ;;  %v289_v23 = vmul.f32 %v1836_v11, %v1828_v7  ;;  %s1188_s25 = sshll.u32 %s1185_s19, 4  ;;  %s1601_s11 = scalar_lea.hbm %s2796_s3, 512  ;;  %s1189_s25 = int_to_ptr.hbm [resolvable:$true] %s1188_s25 }
  0x2d   : > { %vm270_vm3 = vcmp.le.s32.totalorder %v1818_v2, 14  ;;  %v290_v24 = vmul.f32 %v1820_v4, %v1843_v13  ;;  %v291_v25 = vmul.f32 %v1820_v4, %v1846_v14  ;;  %v283_v26 = vmul.f32 %v1836_v11, %v1826_v6  ;;  %s1595_s28 = sshra.s32 %s1189_s25, 4  ;;  %s1596_s28 = int_to_ptr.hbm [resolvable:$true] %s1595_s28 }
  0x2e   : > { %v285_v27 = vmul.f32 %v1846_v14, %v1832_v9  ;;  %v280_v28 = vadd.f32 %v278_v20, %v276_v15  ;;  %v281_v29 = vadd.f32 %v279_v21, %v277_v16  ;;  %v286_v30 = vadd.f32 %v284_v22, %v282_v17  ;;  %s1597_s29 = scalar_lea.hbm %s1596_s28, 256  ;;  %p1602_p10 = scmp.lt.s32.totalorder %s1596_s28, %s2796_s3 }
  0x2f   : > { %v292_v32 = vadd.f32 %v290_v24, %v288_v18  ;;  %v293_v33 = vadd.f32 %v291_v25, %v289_v23  ;;  %v1876_v35 = vperm.slane %v249_v3, 2  ;;  %v323_v39 = vmul.f32 %v271_v10, %v1840_v12  ;;  %p1598_p1 = scmp.ne.s32.totalorder %s1596_s28, %s1597_s29  ;;  %p1603_p12 = scmp.lt.s32.totalorder %s1601_s11, %s1597_s29 }
  0x30   : > { %v287_v34 = vadd.f32 %v285_v27, %v283_v26  ;;  %v294_v36 = vrot.slane %v280_v28, 7  ;;  %v295_v37 = vrot.slane %v281_v29, 7  ;;  %v308_v38 = vadd.f32 %v1856_v19, %v286_v30 }
  0x31   : > { %v301_v40 = vrot.slane %v292_v32, 1  ;;  %v302_v41 = vrot.slane %v293_v33, 1  ;;  %v324_v43 = vmul.f32 %v1836_v11, %v1840_v12  ;;  %v325_v46 = vmul.f32 %v1843_v13, %v1824_v5  ;;  %p1599_p4 = pnand %p1598_p1, %p1776_p5  ;;  %p1604_p13 = por %p1603_p12, %p1602_p10 }
  0x32   : > { %v309_v42 = vadd.f32 %v1856_v19, %v287_v34  ;;  %v298_v44 = vsel %vm296_vm1, %v295_v37, %v294_v36  ;;  %v297_v45 = vsel %vm296_vm1, %v294_v36, %v295_v37  ;;  %v326_v47 = vmul.f32 %v1846_v14, %v1824_v5 }
  0x33   : > { %v299_v48 = vsel %vm267_vm0, %v298_v44, 0.0  ;;  %v304_v49 = vsel %vm303_vm2, %v301_v40, %v302_v41  ;;  %v305_v50 = vsel %vm303_vm2, %v302_v41, %v301_v40  ;;  %v327_v56 = vadd.f32 %v325_v46, %v323_v39  ;;  %v1947_v41 = vld [vmem:[%s1805_s7 + $0x30] sm:$0xff]  ;;  %p1600_p8 = pneg %p1599_p4 }
  0x34   : > { %v311_v51 = vadd.f32 %v309_v42, %v297_v45  ;;  %v310_v52 = vadd.f32 %v308_v38, %v299_v48  ;;  %v307_v53 = vsel %vm270_vm3, %v305_v50, 0.0  ;;  %v328_v57 = vadd.f32 %v326_v47, %v324_v43  ;;  %v1956_v48 = vld [vmem:[%s1805_s7 + $0x38] sm:$0xff] }
  0x35   : > { %v329_v59 = vmul.f32 %v1900_v54, %v1830_v8  ;;  %v330_v60 = vmul.f32 %v1903_v55, %v1830_v8  ;;  %v333_v61 = vmul.f32 %v271_v10, %v1874_v31  ;;  %v335_v63 = vmul.f32 %v1843_v13, %v1826_v6  ;;  %p1605_p0 = pnand %p1604_p13, %p1600_p8 }
  0x36   : > { %v313_v58 = vadd.f32 %v311_v51, %v307_v53  ;;  %v312_v62 = vadd.f32 %v310_v52, %v304_v49  ;;  %v339_v0 = vmul.f32 %v1900_v54, %v1832_v9  ;;  %v343_v3 = vmul.f32 %v271_v10, %v1876_v35 }
  0x37   : > { %v331_v15 = vadd.f32 %v329_v59, %v327_v56  ;;  %v332_v16 = vadd.f32 %v330_v60, %v328_v57  ;;  %v344_v17 = vmul.f32 %v1836_v11, %v1876_v35  ;;  %v345_v18 = vmul.f32 %v1843_v13, %v1828_v7 }
  0x38   : > { %315 = vst [vmem:[%s1917_s22 + $0x8] sm:$0xff] %v313_v58  ;;  %v337_v20 = vadd.f32 %v335_v63, %v333_v61  ;;  %v346_v21 = vmul.f32 %v1846_v14, %v1828_v7  ;;  %v349_v10 = vmul.f32 %v1820_v4, %v1900_v54  ;;  %v350_v22 = vmul.f32 %v1820_v4, %v1903_v55 }
  0x39   : > { %314 = vst [vmem:[%s1917_s22] sm:$0xff] %v312_v62  ;;  %v347_v23 = vadd.f32 %v345_v18, %v343_v3  ;;  %v353_v24 = vrot.slane %v331_v15, 7  ;;  %v354_v25 = vrot.slane %v332_v16, 7  ;;  %v334_v26 = vmul.f32 %v1836_v11, %v1874_v31 }
  0x3a   : > { %v341_v27 = vadd.f32 %v339_v0, %v337_v20  ;;  %v348_v28 = vadd.f32 %v346_v21, %v344_v17  ;;  %v336_v29 = vmul.f32 %v1846_v14, %v1826_v6  ;;  %v340_v30 = vmul.f32 %v1903_v55, %v1832_v9 }
  0x3b   : > { %v351_v32 = vadd.f32 %v349_v10, %v347_v23  ;;  %v356_v33 = vsel %vm296_vm1, %v354_v25, %v353_v24  ;;  %v355_v34 = vsel %vm296_vm1, %v353_v24, %v354_v25  ;;  %v381_v36 = vmul.f32 %v1843_v13, %v1840_v12 }
  0x3c   : > { %v352_v11 = vadd.f32 %v350_v22, %v348_v28  ;;  %v357_v37 = vsel %vm267_vm0, %v356_v33, 0.0  ;;  %v365_v38 = vadd.f32 %v1856_v19, %v341_v27  ;;  %v338_v39 = vadd.f32 %v336_v29, %v334_v26 }
  0x3d   : > { %v359_v40 = vrot.slane %v351_v32, 1  ;;  %v382_v42 = vmul.f32 %v1846_v14, %v1840_v12  ;;  %v383_v43 = vmul.f32 %v1900_v54, %v1824_v5  ;;  %v384_v44 = vmul.f32 %v1903_v55, %v1824_v5 }
  0x3e   : > { %v360_v45 = vrot.slane %v352_v11, 1  ;;  %v367_v46 = vadd.f32 %v365_v38, %v357_v37  ;;  %v342_v47 = vadd.f32 %v340_v30, %v338_v39  ;;  %v387_v49 = vmul.f32 %v1947_v41, %v1830_v8 }
  0x3f   : > { %v385_v50 = vadd.f32 %v383_v43, %v381_v36  ;;  %v386_v51 = vadd.f32 %v384_v44, %v382_v42  ;;  %v388_v52 = vmul.f32 %v1956_v48, %v1830_v8  ;;  %v391_v53 = vmul.f32 %v1843_v13, %v1874_v31  ;;  %v2009_v44 = vld [vmem:[%s1805_s7 + $0x40] sm:$0xff] }
  0x40   : > { %v361_v56 = vsel %vm303_vm2, %v359_v40, %v360_v45  ;;  %v362_v57 = vsel %vm303_vm2, %v360_v45, %v359_v40  ;;  %v366_v58 = vadd.f32 %v1856_v19, %v342_v47  ;;  %v393_v59 = vmul.f32 %v1900_v54, %v1826_v6  ;;  %v2012_v45 = vld [vmem:[%s1805_s7 + $0x48] sm:$0xff] }
  0x41   : > { %v369_v60 = vadd.f32 %v367_v46, %v361_v56  ;;  %v364_v61 = vsel %vm270_vm3, %v362_v57, 0.0  ;;  %v389_v62 = vadd.f32 %v387_v49, %v385_v50  ;;  %v390_v63 = vadd.f32 %v388_v52, %v386_v51 }
  0x42   : > { %v368_v0 = vadd.f32 %v366_v58, %v355_v34  ;;  %v395_v3 = vadd.f32 %v393_v59, %v391_v53  ;;  %v397_v15 = vmul.f32 %v1947_v41, %v1832_v9  ;;  %v401_v16 = vmul.f32 %v1843_v13, %v1876_v35 }
  0x43   : > { %1318 = vst [vmem:[%s1917_s22 + $0x10] sm:$0xff] %v369_v60  ;;  %v402_v17 = vmul.f32 %v1846_v14, %v1876_v35  ;;  %v403_v18 = vmul.f32 %v1900_v54, %v1828_v7  ;;  %v404_v20 = vmul.f32 %v1903_v55, %v1828_v7  ;;  %v407_v21 = vmul.f32 %v1820_v4, %v1947_v41 }
  0x44   : > { %v370_v10 = vadd.f32 %v368_v0, %v364_v61  ;;  %v399_v22 = vadd.f32 %v397_v15, %v395_v3  ;;  %v408_v23 = vmul.f32 %v1820_v4, %v1956_v48  ;;  %v411_v24 = vrot.slane %v389_v62, 7 }
  0x45   : > { %v405_v13 = vadd.f32 %v403_v18, %v401_v16  ;;  %v406_v25 = vadd.f32 %v404_v20, %v402_v17  ;;  %v412_v26 = vrot.slane %v390_v63, 7  ;;  %v392_v27 = vmul.f32 %v1846_v14, %v1874_v31 }
  0x46   : > { %1319 = vst [vmem:[%s1917_s22 + $0x18] sm:$0xff] %v370_v10  ;;  %v423_v28 = vadd.f32 %v1856_v19, %v399_v22  ;;  %v394_v29 = vmul.f32 %v1903_v55, %v1826_v6  ;;  %v398_v30 = vmul.f32 %v1956_v48, %v1832_v9  ;;  %v439_v32 = vmul.f32 %v1900_v54, %v1840_v12 }
  0x47   : > { %v409_v33 = vadd.f32 %v407_v21, %v405_v13  ;;  %v410_v34 = vadd.f32 %v408_v23, %v406_v25  ;;  %v414_v36 = vsel %vm296_vm1, %v412_v26, %v411_v24  ;;  %v413_v14 = vsel %vm296_vm1, %v411_v24, %v412_v26 }
  0x48   : > { %v415_v11 = vsel %vm267_vm0, %v414_v36, 0.0  ;;  %v396_v37 = vadd.f32 %v394_v29, %v392_v27  ;;  %v440_v38 = vmul.f32 %v1903_v55, %v1840_v12  ;;  %v441_v39 = vmul.f32 %v1947_v41, %v1824_v5 }
  0x49   : > { %v417_v40 = vrot.slane %v409_v33, 1  ;;  %v418_v42 = vrot.slane %v410_v34, 1  ;;  %v425_v43 = vadd.f32 %v423_v28, %v415_v11  ;;  %v442_v46 = vmul.f32 %v1956_v48, %v1824_v5 }
  0x4a   : > { %v400_v47 = vadd.f32 %v398_v30, %v396_v37  ;;  %v443_v49 = vadd.f32 %v441_v39, %v439_v32  ;;  %v445_v50 = vmul.f32 %v2009_v44, %v1830_v8  ;;  %v446_v51 = vmul.f32 %v2012_v45, %v1830_v8 }
  0x4b   : > { %v419_v52 = vsel %vm303_vm2, %v417_v40, %v418_v42  ;;  %v420_v53 = vsel %vm303_vm2, %v418_v42, %v417_v40  ;;  %v444_v56 = vadd.f32 %v442_v46, %v440_v38  ;;  %v449_v57 = vmul.f32 %v1900_v54, %v1874_v31  ;;  %v2063_v38 = vld [vmem:[%s1805_s7 + $0x50] sm:$0xff]  ;;  %v2070_v46 = vld [vmem:[%s1805_s7 + $0x58] sm:$0xff] }
  0x4c   : > { %v427_v58 = vadd.f32 %v425_v43, %v419_v52  ;;  %v422_v59 = vsel %vm270_vm3, %v420_v53, 0.0  ;;  %v424_v60 = vadd.f32 %v1856_v19, %v400_v47  ;;  %v447_v61 = vadd.f32 %v445_v50, %v443_v49 }
  0x4d   : > { %v448_v62 = vadd.f32 %v446_v51, %v444_v56  ;;  %v451_v63 = vmul.f32 %v1947_v41, %v1826_v6  ;;  %v455_v0 = vmul.f32 %v2009_v44, %v1832_v9  ;;  %v459_v3 = vmul.f32 %v1900_v54, %v1876_v35 }
  0x4e   : > { %1326 = vst [vmem:[%s1917_s22 + $0x20] sm:$0xff] %v427_v58  ;;  %v426_v15 = vadd.f32 %v424_v60, %v413_v14  ;;  %v460_v16 = vmul.f32 %v1903_v55, %v1876_v35  ;;  %v461_v17 = vmul.f32 %v1947_v41, %v1828_v7  ;;  %v462_v18 = vmul.f32 %v1956_v48, %v1828_v7 }
  0x4f   : > { %v453_v20 = vadd.f32 %v451_v63, %v449_v57  ;;  %v465_v21 = vmul.f32 %v1820_v4, %v2009_v44  ;;  %v466_v10 = vmul.f32 %v1820_v4, %v2012_v45  ;;  %v469_v54 = vrot.slane %v447_v61, 7 }
  0x50   : > { %v428_v22 = vadd.f32 %v426_v15, %v422_v59  ;;  %v463_v23 = vadd.f32 %v461_v17, %v459_v3  ;;  %v464_v24 = vadd.f32 %v462_v18, %v460_v16  ;;  %v470_v13 = vrot.slane %v448_v62, 7 }
  0x51   : > { %v457_v25 = vadd.f32 %v455_v0, %v453_v20  ;;  %v450_v26 = vmul.f32 %v1903_v55, %v1874_v31  ;;  %v452_v27 = vmul.f32 %v1956_v48, %v1826_v6  ;;  %v456_v28 = vmul.f32 %v2012_v45, %v1832_v9 }
  0x52   : > { %1327 = vst [vmem:[%s1917_s22 + $0x28] sm:$0xff] %v428_v22  ;;  %v467_v29 = vadd.f32 %v465_v21, %v463_v23  ;;  %v468_v30 = vadd.f32 %v466_v10, %v464_v24  ;;  %v472_v32 = vsel %vm296_vm1, %v470_v13, %v469_v54  ;;  %v471_v33 = vsel %vm296_vm1, %v469_v54, %v470_v13 }
  0x53   : > { %v473_v34 = vsel %vm267_vm0, %v472_v32, 0.0  ;;  %v481_v55 = vadd.f32 %v1856_v19, %v457_v25  ;;  %v454_v36 = vadd.f32 %v452_v27, %v450_v26  ;;  %v497_v14 = vmul.f32 %v1947_v41, %v1840_v12 }
  0x54   : > { %v475_v11 = vrot.slane %v467_v29, 1  ;;  %v476_v37 = vrot.slane %v468_v30, 1  ;;  %v498_v39 = vmul.f32 %v1956_v48, %v1840_v12  ;;  %v499_v40 = vmul.f32 %v2009_v44, %v1824_v5 }
  0x55   : > { %v483_v42 = vadd.f32 %v481_v55, %v473_v34  ;;  %v458_v43 = vadd.f32 %v456_v28, %v454_v36  ;;  %v500_v47 = vmul.f32 %v2012_v45, %v1824_v5  ;;  %v503_v49 = vmul.f32 %v2063_v38, %v1830_v8 }
  0x56   : > { %v477_v50 = vsel %vm303_vm2, %v475_v11, %v476_v37  ;;  %v478_v51 = vsel %vm303_vm2, %v476_v37, %v475_v11  ;;  %v501_v52 = vadd.f32 %v499_v40, %v497_v14  ;;  %v504_v53 = vmul.f32 %v2070_v46, %v1830_v8  ;;  %v2125_v40 = vld [vmem:[%s1805_s7 + $0x60] sm:$0xff] }
  0x57   : > { %v485_v56 = vadd.f32 %v483_v42, %v477_v50  ;;  %v480_v57 = vsel %vm270_vm3, %v478_v51, 0.0  ;;  %v482_v58 = vadd.f32 %v1856_v19, %v458_v43  ;;  %v502_v59 = vadd.f32 %v500_v47, %v498_v39  ;;  %v2128_v42 = vld [vmem:[%s1805_s7 + $0x68] sm:$0xff] }
  0x58   : > { %v505_v60 = vadd.f32 %v503_v49, %v501_v52  ;;  %v507_v61 = vmul.f32 %v1947_v41, %v1874_v31  ;;  %v509_v62 = vmul.f32 %v2009_v44, %v1826_v6  ;;  %v513_v63 = vmul.f32 %v2063_v38, %v1832_v9 }
  0x59   : > { %1334 = vst [vmem:[%s1917_s22 + $0x30] sm:$0xff] %v485_v56  ;;  %v484_v0 = vadd.f32 %v482_v58, %v471_v33  ;;  %v506_v3 = vadd.f32 %v504_v53, %v502_v59  ;;  %v517_v15 = vmul.f32 %v1947_v41, %v1876_v35  ;;  %v518_v16 = vmul.f32 %v1956_v48, %v1876_v35 }
  0x5a   : > { %v511_v17 = vadd.f32 %v509_v62, %v507_v61  ;;  %v519_v18 = vmul.f32 %v2009_v44, %v1828_v7  ;;  %v520_v20 = vmul.f32 %v2012_v45, %v1828_v7  ;;  %v523_v21 = vmul.f32 %v1820_v4, %v2063_v38 }
  0x5b   : > { %v486_v10 = vadd.f32 %v484_v0, %v480_v57  ;;  %v524_v54 = vmul.f32 %v1820_v4, %v2070_v46  ;;  %v527_v22 = vrot.slane %v505_v60, 7  ;;  %v528_v23 = vrot.slane %v506_v3, 7 }
  0x5c   : > { %v515_v41 = vadd.f32 %v513_v63, %v511_v17  ;;  %v521_v24 = vadd.f32 %v519_v18, %v517_v15  ;;  %v522_v13 = vadd.f32 %v520_v20, %v518_v16  ;;  %v508_v25 = vmul.f32 %v1956_v48, %v1874_v31 }
  0x5d   : > { %1335 = vst [vmem:[%s1917_s22 + $0x38] sm:$0xff] %v486_v10  ;;  %v530_v26 = vsel %vm296_vm1, %v528_v23, %v527_v22  ;;  %v510_v27 = vmul.f32 %v2012_v45, %v1826_v6  ;;  %v514_v28 = vmul.f32 %v2070_v46, %v1832_v9  ;;  %v529_v29 = vsel %vm296_vm1, %v527_v22, %v528_v23 }
  0x5e   : > { %v525_v30 = vadd.f32 %v523_v21, %v521_v24  ;;  %v526_v32 = vadd.f32 %v524_v54, %v522_v13  ;;  %v531_v48 = vsel %vm267_vm0, %v530_v26, 0.0  ;;  %v539_v33 = vadd.f32 %v1856_v19, %v515_v41 }
  0x5f   : > { %v512_v34 = vadd.f32 %v510_v27, %v508_v25  ;;  %v555_v55 = vmul.f32 %v2009_v44, %v1840_v12  ;;  %v556_v36 = vmul.f32 %v2012_v45, %v1840_v12  ;;  %v557_v14 = vmul.f32 %v2063_v38, %v1824_v5 }
  0x60   : > { %v533_v11 = vrot.slane %v525_v30, 1  ;;  %v534_v37 = vrot.slane %v526_v32, 1  ;;  %v541_v39 = vadd.f32 %v539_v33, %v531_v48  ;;  %v558_v43 = vmul.f32 %v2070_v46, %v1824_v5 }
  0x61   : > { %v516_v47 = vadd.f32 %v514_v28, %v512_v34  ;;  %v559_v49 = vadd.f32 %v557_v14, %v555_v55  ;;  %v561_v50 = vmul.f32 %v2125_v40, %v1830_v8  ;;  %v562_v51 = vmul.f32 %v2128_v42, %v1830_v8 }
  0x62   : > { %v535_v52 = vsel %vm303_vm2, %v533_v11, %v534_v37  ;;  %v536_v53 = vsel %vm303_vm2, %v534_v37, %v533_v11  ;;  %v560_v56 = vadd.f32 %v558_v43, %v556_v36  ;;  %v565_v57 = vmul.f32 %v2009_v44, %v1874_v31  ;;  %v2179_v36 = vld [vmem:[%s1805_s7 + $0x70] sm:$0xff]  ;;  %v2186_v43 = vld [vmem:[%s1805_s7 + $0x78] sm:$0xff] }
  0x63   : > { %v543_v58 = vadd.f32 %v541_v39, %v535_v52  ;;  %v538_v59 = vsel %vm270_vm3, %v536_v53, 0.0  ;;  %v540_v60 = vadd.f32 %v1856_v19, %v516_v47  ;;  %v563_v61 = vadd.f32 %v561_v50, %v559_v49 }
  0x64   : > { %v564_v62 = vadd.f32 %v562_v51, %v560_v56  ;;  %v567_v63 = vmul.f32 %v2063_v38, %v1826_v6  ;;  %v571_v0 = vmul.f32 %v2125_v40, %v1832_v9  ;;  %v575_v3 = vmul.f32 %v2009_v44, %v1876_v35 }
  0x65   : > { %1342 = vst [vmem:[%s1917_s22 + $0x40] sm:$0xff] %v543_v58  ;;  %v542_v15 = vadd.f32 %v540_v60, %v529_v29  ;;  %v576_v16 = vmul.f32 %v2012_v45, %v1876_v35  ;;  %v577_v17 = vmul.f32 %v2063_v38, %v1828_v7  ;;  %v578_v18 = vmul.f32 %v2070_v46, %v1828_v7 }
  0x66   : > { %v569_v20 = vadd.f32 %v567_v63, %v565_v57  ;;  %v581_v21 = vmul.f32 %v1820_v4, %v2125_v40  ;;  %v582_v10 = vmul.f32 %v1820_v4, %v2128_v42  ;;  %v585_v44 = vrot.slane %v563_v61, 7 }
  0x67   : > { %v544_v54 = vadd.f32 %v542_v15, %v538_v59  ;;  %v579_v22 = vadd.f32 %v577_v17, %v575_v3  ;;  %v580_v23 = vadd.f32 %v578_v18, %v576_v16  ;;  %v586_v41 = vrot.slane %v564_v62, 7 }
  0x68   : > { %v573_v24 = vadd.f32 %v571_v0, %v569_v20  ;;  %v566_v13 = vmul.f32 %v2012_v45, %v1874_v31  ;;  %v568_v25 = vmul.f32 %v2070_v46, %v1826_v6  ;;  %v572_v26 = vmul.f32 %v2128_v42, %v1832_v9 }
  0x69   : > { %1343 = vst [vmem:[%s1917_s22 + $0x48] sm:$0xff] %v544_v54  ;;  %v583_v27 = vadd.f32 %v581_v21, %v579_v22  ;;  %v584_v28 = vadd.f32 %v582_v10, %v580_v23  ;;  %v588_v29 = vsel %vm296_vm1, %v586_v41, %v585_v44  ;;  %v587_v30 = vsel %vm296_vm1, %v585_v44, %v586_v41 }
  0x6a   : > { %v589_v32 = vsel %vm267_vm0, %v588_v29, 0.0  ;;  %v597_v45 = vadd.f32 %v1856_v19, %v573_v24  ;;  %v570_v48 = vadd.f32 %v568_v25, %v566_v13  ;;  %v613_v33 = vmul.f32 %v2063_v38, %v1840_v12 }
  0x6b   : > { %v591_v34 = vrot.slane %v583_v27, 1  ;;  %v592_v55 = vrot.slane %v584_v28, 1  ;;  %v614_v14 = vmul.f32 %v2070_v46, %v1840_v12  ;;  %v615_v11 = vmul.f32 %v2125_v40, %v1824_v5 }
  0x6c   : > { %v599_v37 = vadd.f32 %v597_v45, %v589_v32  ;;  %v574_v39 = vadd.f32 %v572_v26, %v570_v48  ;;  %v616_v47 = vmul.f32 %v2128_v42, %v1824_v5  ;;  %v619_v49 = vmul.f32 %v2179_v36, %v1830_v8 }
  0x6d   : > { %v593_v50 = vsel %vm303_vm2, %v591_v34, %v592_v55  ;;  %v594_v51 = vsel %vm303_vm2, %v592_v55, %v591_v34  ;;  %v617_v52 = vadd.f32 %v615_v11, %v613_v33  ;;  %v620_v53 = vmul.f32 %v2186_v43, %v1830_v8  ;;  %v2241_v11 = vld [vmem:[%s1805_s7 + $0x80] sm:$0xff] }
  0x6e   : > { %v601_v56 = vadd.f32 %v599_v37, %v593_v50  ;;  %v596_v57 = vsel %vm270_vm3, %v594_v51, 0.0  ;;  %v598_v58 = vadd.f32 %v1856_v19, %v574_v39  ;;  %v618_v59 = vadd.f32 %v616_v47, %v614_v14  ;;  %v2244_v37 = vld [vmem:[%s1805_s7 + $0x88] sm:$0xff] }
  0x6f   : > { %v621_v60 = vadd.f32 %v619_v49, %v617_v52  ;;  %v623_v61 = vmul.f32 %v2063_v38, %v1874_v31  ;;  %v625_v62 = vmul.f32 %v2125_v40, %v1826_v6  ;;  %v629_v63 = vmul.f32 %v2179_v36, %v1832_v9 }
  0x70   : > { %1350 = vst [vmem:[%s1917_s22 + $0x50] sm:$0xff] %v601_v56  ;;  %v600_v0 = vadd.f32 %v598_v58, %v587_v30  ;;  %v622_v3 = vadd.f32 %v620_v53, %v618_v59  ;;  %v633_v15 = vmul.f32 %v2063_v38, %v1876_v35  ;;  %v634_v16 = vmul.f32 %v2070_v46, %v1876_v35 }
  0x71   : > { %v627_v17 = vadd.f32 %v625_v62, %v623_v61  ;;  %v635_v18 = vmul.f32 %v2125_v40, %v1828_v7  ;;  %v636_v20 = vmul.f32 %v2128_v42, %v1828_v7  ;;  %v639_v21 = vmul.f32 %v1820_v4, %v2179_v36 }
  0x72   : > { %v602_v10 = vadd.f32 %v600_v0, %v596_v57  ;;  %v640_v44 = vmul.f32 %v1820_v4, %v2186_v43  ;;  %v643_v54 = vrot.slane %v621_v60, 7  ;;  %v644_v22 = vrot.slane %v622_v3, 7 }
  0x73   : > { %v631_v38 = vadd.f32 %v629_v63, %v627_v17  ;;  %v637_v23 = vadd.f32 %v635_v18, %v633_v15  ;;  %v638_v41 = vadd.f32 %v636_v20, %v634_v16  ;;  %v624_v24 = vmul.f32 %v2070_v46, %v1874_v31 }
  0x74   : > { %1351 = vst [vmem:[%s1917_s22 + $0x58] sm:$0xff] %v602_v10  ;;  %v646_v13 = vsel %vm296_vm1, %v644_v22, %v643_v54  ;;  %v626_v25 = vmul.f32 %v2128_v42, %v1826_v6  ;;  %v630_v26 = vmul.f32 %v2186_v43, %v1832_v9  ;;  %v645_v27 = vsel %vm296_vm1, %v643_v54, %v644_v22 }
  0x75   : > { %v641_v28 = vadd.f32 %v639_v21, %v637_v23  ;;  %v642_v29 = vadd.f32 %v640_v44, %v638_v41  ;;  %v647_v46 = vsel %vm267_vm0, %v646_v13, 0.0  ;;  %v655_v30 = vadd.f32 %v1856_v19, %v631_v38 }
  0x76   : > { %v628_v32 = vadd.f32 %v626_v25, %v624_v24  ;;  %v671_v45 = vmul.f32 %v2125_v40, %v1840_v12  ;;  %v672_v48 = vmul.f32 %v2128_v42, %v1840_v12  ;;  %v673_v33 = vmul.f32 %v2179_v36, %v1824_v5 }
  0x77   : > { %v649_v34 = vrot.slane %v641_v28, 1  ;;  %v650_v55 = vrot.slane %v642_v29, 1  ;;  %v657_v14 = vadd.f32 %v655_v30, %v647_v46  ;;  %v674_v39 = vmul.f32 %v2186_v43, %v1824_v5 }
  0x78   : > { %v632_v47 = vadd.f32 %v630_v26, %v628_v32  ;;  %v675_v49 = vadd.f32 %v673_v33, %v671_v45  ;;  %v677_v50 = vmul.f32 %v2241_v11, %v1830_v8  ;;  %v678_v51 = vmul.f32 %v2244_v37, %v1830_v8 }
  0x79   : > { %v651_v52 = vsel %vm303_vm2, %v649_v34, %v650_v55  ;;  %v652_v53 = vsel %vm303_vm2, %v650_v55, %v649_v34  ;;  %v676_v56 = vadd.f32 %v674_v39, %v672_v48  ;;  %v681_v57 = vmul.f32 %v2125_v40, %v1874_v31  ;;  %v2295_v48 = vld [vmem:[%s1805_s7 + $0x90] sm:$0xff]  ;;  %v2302_v39 = vld [vmem:[%s1805_s7 + $0x98] sm:$0xff] }
  0x7a   : > { %v659_v58 = vadd.f32 %v657_v14, %v651_v52  ;;  %v654_v59 = vsel %vm270_vm3, %v652_v53, 0.0  ;;  %v656_v60 = vadd.f32 %v1856_v19, %v632_v47  ;;  %v679_v61 = vadd.f32 %v677_v50, %v675_v49 }
  0x7b   : > { %v680_v62 = vadd.f32 %v678_v51, %v676_v56  ;;  %v683_v63 = vmul.f32 %v2179_v36, %v1826_v6  ;;  %v687_v0 = vmul.f32 %v2241_v11, %v1832_v9  ;;  %v691_v3 = vmul.f32 %v2125_v40, %v1876_v35 }
  0x7c   : > { %1358 = vst [vmem:[%s1917_s22 + $0x60] sm:$0xff] %v659_v58  ;;  %v658_v15 = vadd.f32 %v656_v60, %v645_v27  ;;  %v692_v16 = vmul.f32 %v2128_v42, %v1876_v35  ;;  %v693_v17 = vmul.f32 %v2179_v36, %v1828_v7  ;;  %v694_v18 = vmul.f32 %v2186_v43, %v1828_v7 }
  0x7d   : > { %v685_v20 = vadd.f32 %v683_v63, %v681_v57  ;;  %v697_v21 = vmul.f32 %v1820_v4, %v2241_v11  ;;  %v698_v10 = vmul.f32 %v1820_v4, %v2244_v37  ;;  %v701_v40 = vrot.slane %v679_v61, 7 }
  0x7e   : > { %v660_v44 = vadd.f32 %v658_v15, %v654_v59  ;;  %v695_v54 = vadd.f32 %v693_v17, %v691_v3  ;;  %v696_v22 = vadd.f32 %v694_v18, %v692_v16  ;;  %v702_v38 = vrot.slane %v680_v62, 7 }
  0x7f   : > { %v689_v23 = vadd.f32 %v687_v0, %v685_v20  ;;  %v682_v41 = vmul.f32 %v2128_v42, %v1874_v31  ;;  %v684_v24 = vmul.f32 %v2186_v43, %v1826_v6  ;;  %v688_v13 = vmul.f32 %v2244_v37, %v1832_v9 }
  0x80   : > { %1359 = vst [vmem:[%s1917_s22 + $0x68] sm:$0xff] %v660_v44  ;;  %v699_v25 = vadd.f32 %v697_v21, %v695_v54  ;;  %v700_v26 = vadd.f32 %v698_v10, %v696_v22  ;;  %v704_v27 = vsel %vm296_vm1, %v702_v38, %v701_v40  ;;  %v703_v28 = vsel %vm296_vm1, %v701_v40, %v702_v38 }
  0x81   : > { %v705_v29 = vsel %vm267_vm0, %v704_v27, 0.0  ;;  %v713_v42 = vadd.f32 %v1856_v19, %v689_v23  ;;  %v686_v46 = vadd.f32 %v684_v24, %v682_v41  ;;  %v729_v30 = vmul.f32 %v2179_v36, %v1840_v12 }
  0x82   : > { %v707_v32 = vrot.slane %v699_v25, 1  ;;  %v708_v45 = vrot.slane %v700_v26, 1  ;;  %v730_v33 = vmul.f32 %v2186_v43, %v1840_v12  ;;  %v731_v34 = vmul.f32 %v2241_v11, %v1824_v5 }
  0x83   : > { %v715_v55 = vadd.f32 %v713_v42, %v705_v29  ;;  %v690_v14 = vadd.f32 %v688_v13, %v686_v46  ;;  %v732_v47 = vmul.f32 %v2244_v37, %v1824_v5  ;;  %v735_v49 = vmul.f32 %v2295_v48, %v1830_v8 }
  0x84   : > { %v709_v50 = vsel %vm303_vm2, %v707_v32, %v708_v45  ;;  %v710_v51 = vsel %vm303_vm2, %v708_v45, %v707_v32  ;;  %v733_v52 = vadd.f32 %v731_v34, %v729_v30  ;;  %v736_v53 = vmul.f32 %v2302_v39, %v1830_v8  ;;  %v2357_v34 = vld [vmem:[%s1805_s7 + $0xa0] sm:$0xff] }
  0x85   : > { %v717_v56 = vadd.f32 %v715_v55, %v709_v50  ;;  %v712_v57 = vsel %vm270_vm3, %v710_v51, 0.0  ;;  %v714_v58 = vadd.f32 %v1856_v19, %v690_v14  ;;  %v734_v59 = vadd.f32 %v732_v47, %v730_v33  ;;  %v2360_v55 = vld [vmem:[%s1805_s7 + $0xa8] sm:$0xff] }
  0x86   : > { %v737_v60 = vadd.f32 %v735_v49, %v733_v52  ;;  %v739_v61 = vmul.f32 %v2179_v36, %v1874_v31  ;;  %v741_v62 = vmul.f32 %v2241_v11, %v1826_v6  ;;  %v745_v63 = vmul.f32 %v2295_v48, %v1832_v9 }
  0x87   : > { %1366 = vst [vmem:[%s1917_s22 + $0x70] sm:$0xff] %v717_v56  ;;  %v716_v0 = vadd.f32 %v714_v58, %v703_v28  ;;  %v738_v3 = vadd.f32 %v736_v53, %v734_v59  ;;  %v749_v15 = vmul.f32 %v2179_v36, %v1876_v35  ;;  %v750_v16 = vmul.f32 %v2186_v43, %v1876_v35 }
  0x88   : > { %v743_v17 = vadd.f32 %v741_v62, %v739_v61  ;;  %v751_v18 = vmul.f32 %v2241_v11, %v1828_v7  ;;  %v752_v20 = vmul.f32 %v2244_v37, %v1828_v7  ;;  %v755_v21 = vmul.f32 %v1820_v4, %v2295_v48 }
  0x89   : > { %v718_v10 = vadd.f32 %v716_v0, %v712_v57  ;;  %v756_v40 = vmul.f32 %v1820_v4, %v2302_v39  ;;  %v759_v44 = vrot.slane %v737_v60, 7  ;;  %v760_v54 = vrot.slane %v738_v3, 7 }
  0x8a   : > { %v747_v36 = vadd.f32 %v745_v63, %v743_v17  ;;  %v753_v22 = vadd.f32 %v751_v18, %v749_v15  ;;  %v754_v38 = vadd.f32 %v752_v20, %v750_v16  ;;  %v740_v23 = vmul.f32 %v2186_v43, %v1874_v31 }
  0x8b   : > { %1367 = vst [vmem:[%s1917_s22 + $0x78] sm:$0xff] %v718_v10  ;;  %v762_v41 = vsel %vm296_vm1, %v760_v54, %v759_v44  ;;  %v742_v24 = vmul.f32 %v2244_v37, %v1826_v6  ;;  %v746_v13 = vmul.f32 %v2302_v39, %v1832_v9  ;;  %v761_v25 = vsel %vm296_vm1, %v759_v44, %v760_v54 }
  0x8c   : > { %v757_v26 = vadd.f32 %v755_v21, %v753_v22  ;;  %v758_v27 = vadd.f32 %v756_v40, %v754_v38  ;;  %v763_v43 = vsel %vm267_vm0, %v762_v41, 0.0  ;;  %v771_v28 = vadd.f32 %v1856_v19, %v747_v36 }
  0x8d   : > { %v744_v29 = vadd.f32 %v742_v24, %v740_v23  ;;  %v787_v42 = vmul.f32 %v2241_v11, %v1840_v12  ;;  %v788_v46 = vmul.f32 %v2244_v37, %v1840_v12  ;;  %v789_v30 = vmul.f32 %v2295_v48, %v1824_v5 }
  0x8e   : > { %v765_v32 = vrot.slane %v757_v26, 1  ;;  %v766_v45 = vrot.slane %v758_v27, 1  ;;  %v773_v33 = vadd.f32 %v771_v28, %v763_v43  ;;  %v790_v14 = vmul.f32 %v2302_v39, %v1824_v5 }
  0x8f   : > { %v748_v47 = vadd.f32 %v746_v13, %v744_v29  ;;  %v791_v49 = vadd.f32 %v789_v30, %v787_v42  ;;  %v793_v50 = vmul.f32 %v2357_v34, %v1830_v8  ;;  %v794_v51 = vmul.f32 %v2360_v55, %v1830_v8  ;;  %v2411_v42 = vld [vmem:[%s1805_s7 + $0xb0] sm:$0xff] }
  0x90   : > { %v767_v52 = vsel %vm303_vm2, %v765_v32, %v766_v45  ;;  %v768_v53 = vsel %vm303_vm2, %v766_v45, %v765_v32  ;;  %v792_v56 = vadd.f32 %v790_v14, %v788_v46  ;;  %v797_v57 = vmul.f32 %v2241_v11, %v1874_v31 }
  0x91   : > { %v775_v58 = vadd.f32 %v773_v33, %v767_v52  ;;  %v770_v59 = vsel %vm270_vm3, %v768_v53, 0.0  ;;  %v772_v60 = vadd.f32 %v1856_v19, %v748_v47  ;;  %v795_v61 = vadd.f32 %v793_v50, %v791_v49  ;;  %v2418_v33 = vld [vmem:[%s1805_s7 + $0xb8] sm:$0xff] }
  0x92   : > { %v796_v62 = vadd.f32 %v794_v51, %v792_v56  ;;  %v799_v63 = vmul.f32 %v2295_v48, %v1826_v6  ;;  %v803_v0 = vmul.f32 %v2357_v34, %v1832_v9  ;;  %v807_v3 = vmul.f32 %v2241_v11, %v1876_v35 }
  0x93   : > { %1374 = vst [vmem:[%s1917_s22 + $0x80] sm:$0xff] %v775_v58  ;;  %v774_v15 = vadd.f32 %v772_v60, %v761_v25  ;;  %v808_v16 = vmul.f32 %v2244_v37, %v1876_v35  ;;  %v809_v17 = vmul.f32 %v2295_v48, %v1828_v7  ;;  %v810_v18 = vmul.f32 %v2302_v39, %v1828_v7 }
  0x94   : > { %v801_v20 = vadd.f32 %v799_v63, %v797_v57  ;;  %v813_v21 = vmul.f32 %v1820_v4, %v2357_v34  ;;  %v814_v10 = vmul.f32 %v1820_v4, %v2360_v55  ;;  %v817_v11 = vrot.slane %v795_v61, 7 }
  0x95   : > { %v776_v40 = vadd.f32 %v774_v15, %v770_v59  ;;  %v811_v44 = vadd.f32 %v809_v17, %v807_v3  ;;  %v812_v54 = vadd.f32 %v810_v18, %v808_v16  ;;  %v818_v36 = vrot.slane %v796_v62, 7  ;;  %v2448_v18 = vld [vmem:[#allocation5 + $0x8] ss:$0 sm:$0xff] }
  0x96   : > { %v805_v22 = vadd.f32 %v803_v0, %v801_v20  ;;  %v798_v38 = vmul.f32 %v2244_v37, %v1874_v31  ;;  %v800_v23 = vmul.f32 %v2302_v39, %v1826_v6  ;;  %v804_v41 = vmul.f32 %v2360_v55, %v1832_v9 }
  0x97   : > { %1375 = vst [vmem:[%s1917_s22 + $0x88] sm:$0xff] %v776_v40  ;;  %v815_v24 = vadd.f32 %v813_v21, %v811_v44  ;;  %v816_v4 = vadd.f32 %v814_v10, %v812_v54  ;;  %v820_v13 = vsel %vm296_vm1, %v818_v36, %v817_v11  ;;  %v819_v25 = vsel %vm296_vm1, %v817_v11, %v818_v36 }
  0x98   : > { %v821_v26 = vsel %vm267_vm0, %v820_v13, 0.0  ;;  %v829_v37 = vadd.f32 %v1856_v19, %v805_v22  ;;  %v802_v27 = vadd.f32 %v800_v23, %v798_v38  ;;  %v845_v43 = vmul.f32 %v2295_v48, %v1840_v12  ;;  %v2470_v13 = vld [vmem:[%s2795_s2] ss:$0 sm:$0xff] }
  0x99   : > { %v823_v28 = vrot.slane %v815_v24, 1  ;;  %v824_v29 = vrot.slane %v816_v4, 1  ;;  %v846_v46 = vmul.f32 %v2302_v39, %v1840_v12  ;;  %v847_v30 = vmul.f32 %v2357_v34, %v1824_v5 }
  0x9a   : > { %v831_v32 = vadd.f32 %v829_v37, %v821_v26  ;;  %v806_v45 = vadd.f32 %v804_v41, %v802_v27  ;;  %v848_v14 = vmul.f32 %v2360_v55, %v1824_v5  ;;  %v851_v47 = vmul.f32 %v2411_v42, %v1830_v8 }
  0x9b   : > { %v825_v49 = vsel %vm303_vm2, %v823_v28, %v824_v29  ;;  %v826_v50 = vsel %vm303_vm2, %v824_v29, %v823_v28  ;;  %v849_v51 = vadd.f32 %v847_v30, %v845_v43  ;;  %v852_v52 = vmul.f32 %v2418_v33, %v1830_v8  ;;  %v2480_v30 = vld [vmem:[%s1805_s7 + $0xc0] sm:$0xff] }
  0x9c   : > { %v833_v53 = vadd.f32 %v831_v32, %v825_v49  ;;  %v828_v56 = vsel %vm270_vm3, %v826_v50, 0.0  ;;  %v830_v57 = vadd.f32 %v1856_v19, %v806_v45  ;;  %v850_v58 = vadd.f32 %v848_v14, %v846_v46  ;;  %v2483_v32 = vld [vmem:[%s1805_s7 + $0xc8] sm:$0xff] }
  0x9d   : > { %v853_v59 = vadd.f32 %v851_v47, %v849_v51  ;;  %v855_v60 = vmul.f32 %v2295_v48, %v1874_v31  ;;  %v857_v61 = vmul.f32 %v2357_v34, %v1826_v6  ;;  %v861_v62 = vmul.f32 %v2411_v42, %v1832_v9 }
  0x9e   : > { %1382 = vst [vmem:[%s1917_s22 + $0x90] sm:$0xff] %v833_v53  ;;  %v832_v63 = vadd.f32 %v830_v57, %v819_v25  ;;  %v854_v0 = vadd.f32 %v852_v52, %v850_v58  ;;  %v865_v3 = vmul.f32 %v2295_v48, %v1876_v35  ;;  %v866_v19 = vmul.f32 %v2302_v39, %v1876_v35 }
  0x9f   : > { %v859_v15 = vadd.f32 %v857_v61, %v855_v60  ;;  %v867_v16 = vmul.f32 %v2357_v34, %v1828_v7  ;;  %v868_v17 = vmul.f32 %v2360_v55, %v1828_v7  ;;  %v871_v20 = vmul.f32 %v2448_v18, %v2411_v42 }
  0xa0   : > { %v834_v21 = vadd.f32 %v832_v63, %v828_v56  ;;  %v872_v10 = vmul.f32 %v2448_v18, %v2418_v33  ;;  %v875_v48 = vrot.slane %v853_v59, 7  ;;  %v876_v11 = vrot.slane %v854_v0, 7 }
  0xa1   : > { %v863_v40 = vadd.f32 %v861_v62, %v859_v15  ;;  %v869_v44 = vadd.f32 %v867_v16, %v865_v3  ;;  %v870_v54 = vadd.f32 %v868_v17, %v866_v19  ;;  %v856_v36 = vmul.f32 %v2302_v39, %v1874_v31 }
  0xa2   : > { %1383 = vst [vmem:[%s1917_s22 + $0x98] sm:$0xff] %v834_v21  ;;  %v878_v22 = vsel %vm296_vm1, %v876_v11, %v875_v48  ;;  %v858_v38 = vmul.f32 %v2360_v55, %v1826_v6  ;;  %v862_v23 = vmul.f32 %v2418_v33, %v1832_v9  ;;  %v877_v41 = vsel %vm296_vm1, %v875_v48, %v876_v11 }
  0xa3   : > { %v873_v24 = vadd.f32 %v871_v20, %v869_v44  ;;  %v874_v4 = vadd.f32 %v872_v10, %v870_v54  ;;  %v879_v39 = vsel %vm267_vm0, %v878_v22, 0.0  ;;  %v887_v25 = vadd.f32 %v2470_v13, %v863_v40 }
  0xa4   : > { %v860_v26 = vadd.f32 %v858_v38, %v856_v36  ;;  %v903_v37 = vmul.f32 %v2357_v34, %v1840_v12  ;;  %v904_v27 = vmul.f32 %v2360_v55, %v1840_v12  ;;  %v905_v43 = vmul.f32 %v2411_v42, %v1824_v5 }
  0xa5   : > { %v881_v28 = vrot.slane %v873_v24, 1  ;;  %v882_v29 = vrot.slane %v874_v4, 1  ;;  %v889_v46 = vadd.f32 %v887_v25, %v879_v39  ;;  %v906_v45 = vmul.f32 %v2418_v33, %v1824_v5 }
  0xa6   : > { %v864_v14 = vadd.f32 %v862_v23, %v860_v26  ;;  %v907_v47 = vadd.f32 %v905_v43, %v903_v37  ;;  %v909_v49 = vmul.f32 %v2480_v30, %v1830_v8  ;;  %v910_v50 = vmul.f32 %v2483_v32, %v1830_v8 }
  0xa7   : > { %v883_v51 = vsel %vm303_vm2, %v881_v28, %v882_v29  ;;  %v884_v52 = vsel %vm303_vm2, %v882_v29, %v881_v28  ;;  %v908_v53 = vadd.f32 %v906_v45, %v904_v27  ;;  %v913_v56 = vmul.f32 %v2357_v34, %v1874_v31  ;;  %v2534_v27 = vld [vmem:[%s1805_s7 + $0xd0] sm:$0xff]  ;;  %v2541_v45 = vld [vmem:[%s1805_s7 + $0xd8] sm:$0xff] }
  0xa8   : > { %v891_v57 = vadd.f32 %v889_v46, %v883_v51  ;;  %v886_v58 = vsel %vm270_vm3, %v884_v52, 0.0  ;;  %v888_v59 = vadd.f32 %v2470_v13, %v864_v14  ;;  %v911_v60 = vadd.f32 %v909_v49, %v907_v47 }
  0xa9   : > { %v912_v61 = vadd.f32 %v910_v50, %v908_v53  ;;  %v915_v62 = vmul.f32 %v2411_v42, %v1826_v6  ;;  %v919_v63 = vmul.f32 %v2480_v30, %v1832_v9  ;;  %v923_v0 = vmul.f32 %v2357_v34, %v1876_v35 }
  0xaa   : > { %1390 = vst [vmem:[%s1917_s22 + $0xa0] sm:$0xff] %v891_v57  ;;  %v890_v3 = vadd.f32 %v888_v59, %v877_v41  ;;  %v924_v19 = vmul.f32 %v2360_v55, %v1876_v35  ;;  %v925_v15 = vmul.f32 %v2411_v42, %v1828_v7  ;;  %v926_v16 = vmul.f32 %v2418_v33, %v1828_v7 }
  0xab   : > { %v917_v17 = vadd.f32 %v915_v62, %v913_v56  ;;  %v929_v20 = vmul.f32 %v2448_v18, %v2480_v30  ;;  %v930_v21 = vmul.f32 %v2448_v18, %v2483_v32  ;;  %v933_v34 = vrot.slane %v911_v60, 7 }
  0xac   : > { %v892_v10 = vadd.f32 %v890_v3, %v886_v58  ;;  %v927_v48 = vadd.f32 %v925_v15, %v923_v0  ;;  %v928_v11 = vadd.f32 %v926_v16, %v924_v19  ;;  %v934_v40 = vrot.slane %v912_v61, 7 }
  0xad   : > { %v921_v44 = vadd.f32 %v919_v63, %v917_v17  ;;  %v914_v54 = vmul.f32 %v2360_v55, %v1874_v31  ;;  %v916_v36 = vmul.f32 %v2418_v33, %v1826_v6  ;;  %v920_v22 = vmul.f32 %v2483_v32, %v1832_v9 }
  0xae   : > { %1391 = vst [vmem:[%s1917_s22 + $0xa8] sm:$0xff] %v892_v10  ;;  %v931_v38 = vadd.f32 %v929_v20, %v927_v48  ;;  %v932_v23 = vadd.f32 %v930_v21, %v928_v11  ;;  %v936_v41 = vsel %vm296_vm1, %v934_v40, %v933_v34  ;;  %v935_v24 = vsel %vm296_vm1, %v933_v34, %v934_v40 }
  0xaf   : > { %v937_v4 = vsel %vm267_vm0, %v936_v41, 0.0  ;;  %v945_v55 = vadd.f32 %v2470_v13, %v921_v44  ;;  %v918_v39 = vadd.f32 %v916_v36, %v914_v54  ;;  %v961_v25 = vmul.f32 %v2411_v42, %v1840_v12 }
  0xb0   : > { %v939_v26 = vrot.slane %v931_v38, 1  ;;  %v940_v37 = vrot.slane %v932_v23, 1  ;;  %v962_v43 = vmul.f32 %v2418_v33, %v1840_v12  ;;  %v963_v28 = vmul.f32 %v2480_v30, %v1824_v5 }
  0xb1   : > { %v947_v29 = vadd.f32 %v945_v55, %v937_v4  ;;  %v922_v46 = vadd.f32 %v920_v22, %v918_v39  ;;  %v964_v14 = vmul.f32 %v2483_v32, %v1824_v5  ;;  %v967_v47 = vmul.f32 %v2534_v27, %v1830_v8 }
  0xb2   : > { %v941_v49 = vsel %vm303_vm2, %v939_v26, %v940_v37  ;;  %v942_v50 = vsel %vm303_vm2, %v940_v37, %v939_v26  ;;  %v965_v51 = vadd.f32 %v963_v28, %v961_v25  ;;  %v968_v52 = vmul.f32 %v2541_v45, %v1830_v8  ;;  %v2596_v28 = vld [vmem:[%s1805_s7 + $0xe0] sm:$0xff] }
  0xb3   : > { %v949_v53 = vadd.f32 %v947_v29, %v941_v49  ;;  %v944_v56 = vsel %vm270_vm3, %v942_v50, 0.0  ;;  %v946_v57 = vadd.f32 %v2470_v13, %v922_v46  ;;  %v966_v58 = vadd.f32 %v964_v14, %v962_v43  ;;  %v2599_v29 = vld [vmem:[%s1805_s7 + $0xe8] sm:$0xff] }
  0xb4   : > { %v969_v59 = vadd.f32 %v967_v47, %v965_v51  ;;  %v971_v60 = vmul.f32 %v2411_v42, %v1874_v31  ;;  %v973_v61 = vmul.f32 %v2480_v30, %v1826_v6  ;;  %v977_v62 = vmul.f32 %v2534_v27, %v1832_v9 }
  0xb5   : > { %1398 = vst [vmem:[%s1917_s22 + $0xb0] sm:$0xff] %v949_v53  ;;  %v948_v63 = vadd.f32 %v946_v57, %v935_v24  ;;  %v970_v0 = vadd.f32 %v968_v52, %v966_v58  ;;  %v981_v3 = vmul.f32 %v2411_v42, %v1876_v35  ;;  %v982_v19 = vmul.f32 %v2418_v33, %v1876_v35 }
  0xb6   : > { %v975_v15 = vadd.f32 %v973_v61, %v971_v60  ;;  %v983_v16 = vmul.f32 %v2480_v30, %v1828_v7  ;;  %v984_v17 = vmul.f32 %v2483_v32, %v1828_v7  ;;  %v987_v20 = vmul.f32 %v2448_v18, %v2534_v27 }
  0xb7   : > { %v950_v21 = vadd.f32 %v948_v63, %v944_v56  ;;  %v988_v34 = vmul.f32 %v2448_v18, %v2541_v45  ;;  %v991_v10 = vrot.slane %v969_v59, 7  ;;  %v992_v48 = vrot.slane %v970_v0, 7 }
  0xb8   : > { %v979_v42 = vadd.f32 %v977_v62, %v975_v15  ;;  %v985_v11 = vadd.f32 %v983_v16, %v981_v3  ;;  %v986_v40 = vadd.f32 %v984_v17, %v982_v19  ;;  %v972_v44 = vmul.f32 %v2418_v33, %v1874_v31 }
  0xb9   : > { %1399 = vst [vmem:[%s1917_s22 + $0xb8] sm:$0xff] %v950_v21  ;;  %v994_v54 = vsel %vm296_vm1, %v992_v48, %v991_v10  ;;  %v974_v36 = vmul.f32 %v2483_v32, %v1826_v6  ;;  %v978_v22 = vmul.f32 %v2541_v45, %v1832_v9  ;;  %v993_v38 = vsel %vm296_vm1, %v991_v10, %v992_v48 }
  0xba   : > { %v989_v23 = vadd.f32 %v987_v20, %v985_v11  ;;  %v990_v41 = vadd.f32 %v988_v34, %v986_v40  ;;  %v995_v33 = vsel %vm267_vm0, %v994_v54, 0.0  ;;  %v1003_v24 = vadd.f32 %v2470_v13, %v979_v42 }
  0xbb   : > { %v976_v4 = vadd.f32 %v974_v36, %v972_v44  ;;  %v1019_v55 = vmul.f32 %v2480_v30, %v1840_v12  ;;  %v1020_v39 = vmul.f32 %v2483_v32, %v1840_v12  ;;  %v1021_v25 = vmul.f32 %v2534_v27, %v1824_v5 }
  0xbc   : > { %v997_v26 = vrot.slane %v989_v23, 1  ;;  %v998_v37 = vrot.slane %v990_v41, 1  ;;  %v1005_v43 = vadd.f32 %v1003_v24, %v995_v33  ;;  %v1022_v46 = vmul.f32 %v2541_v45, %v1824_v5  ;;  %v2645_v41 = vld [vmem:[%s1805_s7 + $0xf0] sm:$0xff] }
  0xbd   : > { %v980_v14 = vadd.f32 %v978_v22, %v976_v4  ;;  %v1023_v47 = vadd.f32 %v1021_v25, %v1019_v55  ;;  %v1025_v49 = vmul.f32 %v2596_v28, %v1830_v8  ;;  %v1026_v50 = vmul.f32 %v2599_v29, %v1830_v8  ;;  %v2651_v4 = vld [vmem:[%s1805_s7 + $0xf8] sm:$0xff] }
  0xbe   : > { %v999_v51 = vsel %vm303_vm2, %v997_v26, %v998_v37  ;;  %v1000_v52 = vsel %vm303_vm2, %v998_v37, %v997_v26  ;;  %v1024_v53 = vadd.f32 %v1022_v46, %v1020_v39  ;;  %v1029_v56 = vmul.f32 %v2480_v30, %v1874_v31 }
  0xbf   : > { %v1007_v57 = vadd.f32 %v1005_v43, %v999_v51  ;;  %v1002_v58 = vsel %vm270_vm3, %v1000_v52, 0.0  ;;  %v1004_v59 = vadd.f32 %v2470_v13, %v980_v14  ;;  %v1027_v60 = vadd.f32 %v1025_v49, %v1023_v47 }
  0xc0   : > { %v1028_v61 = vadd.f32 %v1026_v50, %v1024_v53  ;;  %v1031_v62 = vmul.f32 %v2534_v27, %v1826_v6  ;;  %v1035_v63 = vmul.f32 %v2596_v28, %v1832_v9  ;;  %v1039_v0 = vmul.f32 %v2480_v30, %v1876_v35 }
  0xc1   : > { %1406 = vst [vmem:[%s1917_s22 + $0xc0] sm:$0xff] %v1007_v57  ;;  %v1006_v3 = vadd.f32 %v1004_v59, %v993_v38  ;;  %v1040_v19 = vmul.f32 %v2483_v32, %v1876_v35  ;;  %v1041_v15 = vmul.f32 %v2534_v27, %v1828_v7  ;;  %v1042_v16 = vmul.f32 %v2541_v45, %v1828_v7 }
  0xc2   : > { %v1033_v17 = vadd.f32 %v1031_v62, %v1029_v56  ;;  %v1045_v20 = vmul.f32 %v2448_v18, %v2596_v28  ;;  %v1046_v30 = vmul.f32 %v2448_v18, %v2599_v29  ;;  %v1049_v21 = vrot.slane %v1027_v60, 7 }
  0xc3   : > { %v1008_v34 = vadd.f32 %v1006_v3, %v1002_v58  ;;  %v1043_v10 = vadd.f32 %v1041_v15, %v1039_v0  ;;  %v1044_v48 = vadd.f32 %v1042_v16, %v1040_v19  ;;  %v1050_v42 = vrot.slane %v1028_v61, 7 }
  0xc4   : > { %v1037_v11 = vadd.f32 %v1035_v63, %v1033_v17  ;;  %v1030_v40 = vmul.f32 %v2483_v32, %v1874_v31  ;;  %v1032_v44 = vmul.f32 %v2541_v45, %v1826_v6  ;;  %v1036_v54 = vmul.f32 %v2599_v29, %v1832_v9 }
  0xc5   : > { %1407 = vst [vmem:[%s1917_s22 + $0xc8] sm:$0xff] %v1008_v34  ;;  %v1047_v36 = vadd.f32 %v1045_v20, %v1043_v10  ;;  %v1048_v22 = vadd.f32 %v1046_v30, %v1044_v48  ;;  %v1052_v38 = vsel %vm296_vm1, %v1050_v42, %v1049_v21  ;;  %v1051_v23 = vsel %vm296_vm1, %v1049_v21, %v1050_v42 }
  0xc6   : > { %v1053_v32 = vsel %vm267_vm0, %v1052_v38, 0.0  ;;  %v1061_v33 = vadd.f32 %v2470_v13, %v1037_v11  ;;  %v1034_v24 = vadd.f32 %v1032_v44, %v1030_v40  ;;  %v1077_v55 = vmul.f32 %v2534_v27, %v1840_v12 }
  0xc7   : > { %v1055_v39 = vrot.slane %v1047_v36, 1  ;;  %v1056_v25 = vrot.slane %v1048_v22, 1  ;;  %v1078_v26 = vmul.f32 %v2541_v45, %v1840_v12  ;;  %v1079_v37 = vmul.f32 %v2596_v28, %v1824_v5 }
  0xc8   : > { %v1063_v43 = vadd.f32 %v1061_v33, %v1053_v32  ;;  %v1038_v46 = vadd.f32 %v1036_v54, %v1034_v24  ;;  %v1080_v14 = vmul.f32 %v2599_v29, %v1824_v5  ;;  %v1083_v47 = vmul.f32 %v2645_v41, %v1830_v8 }
  0xc9   : > { %v1057_v49 = vsel %vm303_vm2, %v1055_v39, %v1056_v25  ;;  %v1058_v50 = vsel %vm303_vm2, %v1056_v25, %v1055_v39  ;;  %v1081_v51 = vadd.f32 %v1079_v37, %v1077_v55  ;;  %v1084_v52 = vmul.f32 %v2651_v4, %v1830_v8 }
  0xca   : > { %v1065_v53 = vadd.f32 %v1063_v43, %v1057_v49  ;;  %v1060_v56 = vsel %vm270_vm3, %v1058_v50, 0.0  ;;  %v1062_v57 = vadd.f32 %v2470_v13, %v1038_v46  ;;  %v1082_v58 = vadd.f32 %v1080_v14, %v1078_v26 }
  0xcb   : > { %v1085_v59 = vadd.f32 %v1083_v47, %v1081_v51  ;;  %v1087_v60 = vmul.f32 %v2534_v27, %v1874_v31  ;;  %v1089_v61 = vmul.f32 %v2596_v28, %v1826_v6  ;;  %v1093_v62 = vmul.f32 %v2645_v41, %v1832_v9 }
  0xcc   : > { %1414 = vst [vmem:[%s1917_s22 + $0xd0] sm:$0xff] %v1065_v53  ;;  %v1064_v63 = vadd.f32 %v1062_v57, %v1051_v23  ;;  %v1086_v8 = vadd.f32 %v1084_v52, %v1082_v58  ;;  %v1097_v0 = vmul.f32 %v2534_v27, %v1876_v35  ;;  %v1098_v3 = vmul.f32 %v2541_v45, %v1876_v35 }
  0xcd   : > { %v1091_v19 = vadd.f32 %v1089_v61, %v1087_v60  ;;  %v1099_v15 = vmul.f32 %v2596_v28, %v1828_v7  ;;  %v1100_v16 = vmul.f32 %v2599_v29, %v1828_v7  ;;  %v1103_v17 = vmul.f32 %v2448_v18, %v2645_v41 }
  0xce   : > { %v1066_v20 = vadd.f32 %v1064_v63, %v1060_v56  ;;  %v1104_v30 = vmul.f32 %v2448_v18, %v2651_v4  ;;  %v1107_v21 = vrot.slane %v1085_v59, 7  ;;  %v1108_v34 = vrot.slane %v1086_v8, 7 }
  0xcf   : > { %v1095_v27 = vadd.f32 %v1093_v62, %v1091_v19  ;;  %v1101_v10 = vadd.f32 %v1099_v15, %v1097_v0  ;;  %v1102_v48 = vadd.f32 %v1100_v16, %v1098_v3  ;;  %v1088_v42 = vmul.f32 %v2541_v45, %v1874_v31 }
  0xd0   : > { %1415 = vst [vmem:[%s1917_s22 + $0xd8] sm:$0xff] %v1066_v20  ;;  %v1110_v11 = vsel %vm296_vm1, %v1108_v34, %v1107_v21  ;;  %v1090_v40 = vmul.f32 %v2599_v29, %v1826_v6  ;;  %v1094_v44 = vmul.f32 %v2651_v4, %v1832_v9  ;;  %v1109_v18 = vsel %vm296_vm1, %v1107_v21, %v1108_v34 }
  0xd1   : > { %v1105_v54 = vadd.f32 %v1103_v17, %v1101_v10  ;;  %v1106_v36 = vadd.f32 %v1104_v30, %v1102_v48  ;;  %v1111_v22 = vsel %vm267_vm0, %v1110_v11, 0.0  ;;  %v1119_v45 = vadd.f32 %v2470_v13, %v1095_v27 }
  0xd2   : > { %v1092_v38 = vadd.f32 %v1090_v40, %v1088_v42  ;;  %v1132_v23 = vmul.f32 %v2596_v28, %v1840_v12  ;;  %v1133_v32 = vmul.f32 %v2599_v29, %v1840_v12  ;;  %v1134_v9 = vmul.f32 %v2645_v41, %v1824_v5 }
  0xd3   : > { %v1113_v33 = vrot.slane %v1105_v54, 1  ;;  %v1114_v24 = vrot.slane %v1106_v36, 1  ;;  %v1121_v55 = vadd.f32 %v1119_v45, %v1111_v22  ;;  %v1135_v39 = vmul.f32 %v2651_v4, %v1824_v5 }
  0xd4   : > { %v1096_v25 = vadd.f32 %v1094_v44, %v1092_v38  ;;  %v1136_v26 = vadd.f32 %v1134_v9, %v1132_v23  ;;  %v1138_v37 = vmul.f32 %v2596_v28, %v1874_v31  ;;  %v1140_v43 = vmul.f32 %v2645_v41, %v1826_v6 }
  0xd5   : > { %v1115_v12 = vsel %vm303_vm2, %v1113_v33, %v1114_v24  ;;  %v1116_v46 = vsel %vm303_vm2, %v1114_v24, %v1113_v33  ;;  %v1137_v14 = vadd.f32 %v1135_v39, %v1133_v32  ;;  %v1144_v5 = vmul.f32 %v2596_v28, %v1876_v35 }
  0xd6   : > { %v1123_v47 = vadd.f32 %v1121_v55, %v1115_v12  ;;  %v1118_v49 = vsel %vm270_vm3, %v1116_v46, 0.0  ;;  %v1120_v50 = vadd.f32 %v2470_v13, %v1096_v25  ;;  %v1142_v51 = vadd.f32 %v1140_v43, %v1138_v37 }
  0xd7   : > { %v1145_v52 = vmul.f32 %v2599_v29, %v1876_v35  ;;  %v1146_v53 = vmul.f32 %v2645_v41, %v1828_v7  ;;  %v1147_v56 = vmul.f32 %v2651_v4, %v1828_v7  ;;  %v1150_v57 = vrot.slane %v1136_v26, 7 }
  0xd8   : > { %1422 = vst [vmem:[%s1917_s22 + $0xe0] sm:$0xff] %v1123_v47  ;;  %v1122_v28 = vadd.f32 %v1120_v50, %v1109_v18  ;;  %v1151_v58 = vrot.slane %v1137_v14, 7  ;;  %v1162_v59 = vadd.f32 %v2470_v13, %v1142_v51  ;;  %v1139_v60 = vmul.f32 %v2599_v29, %v1874_v31 }
  0xd9   : > { %v1148_v61 = vadd.f32 %v1146_v53, %v1144_v5  ;;  %v1149_v35 = vadd.f32 %v1147_v56, %v1145_v52  ;;  %v1141_v41 = vmul.f32 %v2651_v4, %v1826_v6 }
  0xda   : > { %v1124_v62 = vadd.f32 %v1122_v28, %v1118_v49  ;;  %v1153_v7 = vsel %vm296_vm1, %v1151_v58, %v1150_v57  ;;  %v1152_v6 = vsel %vm296_vm1, %v1150_v57, %v1151_v58 }
  0xdb   : > { %v1154_v63 = vsel %vm267_vm0, %v1153_v7, 0.0  ;;  %v1156_v8 = vrot.slane %v1148_v61, 1  ;;  %v1157_v31 = vrot.slane %v1149_v35, 1  ;;  %v1143_v29 = vadd.f32 %v1141_v41, %v1139_v60 }
  0xdc   : > { %1423 = vst [vmem:[%s1917_s22 + $0xe8] sm:$0xff] %v1124_v62  ;;  %v1164_v0 = vadd.f32 %v1162_v59, %v1154_v63 }
  0xdd   : > { %v1158_v4 = vsel %vm303_vm2, %v1156_v8, %v1157_v31  ;;  %v1159_v3 = vsel %vm303_vm2, %v1157_v31, %v1156_v8  ;;  %v1163_v19 = vadd.f32 %v2470_v13, %v1143_v29 }
  0xde   : > { %v1166_v15 = vadd.f32 %v1164_v0, %v1158_v4  ;;  %v1161_v16 = vsel %vm270_vm3, %v1159_v3, 0.0 }
  0xdf   : > { %v1165_v17 = vadd.f32 %v1163_v19, %v1152_v6 }
  0xe0   : > { %1428 = vst [vmem:[%s1917_s22 + $0xf0] sm:$0xff] %v1166_v15 }
  0xe1   : > { %v1167_v20 = vadd.f32 %v1165_v17, %v1161_v16 }
  0xe3   : > { %1429 = vst [vmem:[%s1917_s22 + $0xf8] sm:$0xff] %v1167_v20 }
  0xe4   : > { %1608 = shalt.err (!%p1605_p0)
}
  0xe5   : > { %s1672_s6 = smov 128   ;;  %s1673_s20 = smov 8  }
  0xe6   : > { %1446 = dma.vmem_to_hbm [thread:$0]  (%p1776_p5), %s1187_s24, 4096, %s1189_s25, %s1172_s26, %s1672_s6, %s1672_s6, %s1673_s20  }
  0xe7 PF: > { %s1203_s22 = sand.u32 1, %s1647_s12   ;;  %p1457_p3 = pnand %p1303_p11, %p1743_p6 }
  0xe8   : > { %s1204_s27 = scalar_lea.sflag [#allocation4], %s1203_s22 }
  0xe9   : > { %p1458_p7 = pneg %p1457_p3 }
  0xeb   : > { %1642 = dma.done.wait (%p1458_p7), %s1204_s27, 4096  }
  0xec   : > { %1644 = vsyncadd (%p1458_p7), %s1204_s27, 4294963200  ;;  %s20_s17 = sadd.s32 1, %s1667_s17   ;;  %s2808_s12 = smov %s1651_s13 }
  0xed   : > { %p17_p9 = scmp.ge.s32.totalorder %s20_s17, 4   ;;  %s2809_s13 = smov %s1655_s14 }
  0xee   : > { %s2810_s14 = smov %s1785_s18  ;;  %s2811_s15 = smov %s1663_s16 }
  0xef   : > { %s2812_s16 = smov %s2814_s5  ;;  %19 = sbr.rel (!%p17_p9) target bundleno = 9 (0x9), region = 115 }
  0xf4   :  { %1210 = vsyncpa [#allocation3], 1 }
  0xf5   :  { %1212 = vsyncpa [#allocation3 + $0x1], 1 }
  0xf6   :  { %1213 = vsyncpa [#allocation6], 1 }
  0xf7   :  { %1214 = vsyncpa [#allocation4], 1 }
  0xf8   :  { %1216 = vsyncpa [#allocation4 + $0x1], 1 }

</bundles_post_ra>
